<compile_context>
chip_gen: v7x
topology: tpu7x:2x2x1
jax: 0.10.0
libtpu: 0.0.40
codegen_flags: <defaults>
</compile_context>

<pallas_src>
import functools

import jax
import jax.numpy as jnp
from jax import lax
from jax.experimental import pallas as pl
from jax.experimental.pallas import tpu as pltpu


def _conv2d_attn_kernel(x_ref, w1_ref, w2_ref, shift_ref, out_ref, *,
                        ksize_h, ksize_w, ho, wo):
    """x_ref:  (ipb, Hp, Wp, Cin)      f32   padded NHWC input block
       w1_ref: (KH*KW, Cin, Cpad)      bf16  conv weight, BN scale folded, lane-padded
       w2_ref: (Cpad, Cpad)            bf16  1x1 attn weight, BN scale folded
       shift_ref: (2, Cpad)            f32   [bn1 shift; bn2 shift]
       out_ref: (ipb*Ho*Wo, Cpad)      f32   gated output (lane-dense)."""
    cin = x_ref.shape[3]
    rows, cpad = out_ref.shape
    cdt = w1_ref.dtype  # bf16 matmul operands, f32 accumulation

    # ---- KxK conv as KH*KW shifted matmuls on the MXU (f32 accumulator) ----
    acc = jnp.zeros((rows, cpad), jnp.float32)
    for dh in range(ksize_h):
        for dw in range(ksize_w):
            # (ipb, Ho, Wo, Cin): H is a leading dim (free slice), W is a static
            # sublane-range slice.  Wo is a multiple of 8 so the collapse below is a
            # layout no-op.
            patch = x_ref[:, dh:dh + ho, dw:dw + wo, :]
            patch = patch.reshape(rows, cin).astype(cdt)
            acc = acc + jnp.dot(patch, w1_ref[dh * ksize_w + dw],
                                preferred_element_type=jnp.float32)

    # folded BatchNorm shift (scale already folded into w1) + ReLU, in f32
    y = jnp.maximum(acc + shift_ref[0:1, :], 0.0)

    # ---- attn conv (1x1) as matmul, folded BN shift, sigmoid gate ----
    a = jnp.dot(y.astype(cdt), w2_ref[...], preferred_element_type=jnp.float32)
    a = a + shift_ref[1:2, :]
    # sigmoid via EUP: exp + approximate reciprocal (VALU stays free)
    a = pl.reciprocal(1.0 + jnp.exp(-a), approx=True)

    out_ref[...] = (y * a).astype(out_ref.dtype)


def conv2d_attn_pallas(x_nchw, params, *, kernel_size, padding,
                       images_per_block=None, compute_dtype=jnp.bfloat16):
    """x_nchw: (N, Cin, H, W) float32.  Returns (N, Cout, Ho, Wo) float32."""
    (w1, b1, g1, be1, rm1, rv1, w2, b2, g2, be2, rm2, rv2) = params
    N, Cin, H, W = x_nchw.shape
    Cout = w1.shape[0]
    KH = KW = kernel_size
    P = padding
    Hp, Wp = H + 2 * P, W + 2 * P
    Ho, Wo = Hp - KH + 1, Wp - KW + 1
    HW = Ho * Wo

    # lane-dense channel padding (unmasked vst on the output)
    LANES = 128
    Cpad = ((Cout + LANES - 1) // LANES) * LANES

    # Row-tile sizing: target >= 512 rows per block but keep >= 2 parallel grid steps
    # (megacore / v7x's 2 TensorCores) when the batch allows it.
    if images_per_block is None:
        images_per_block = max(1, 512 // HW)
        if N >= 2:
            images_per_block = min(images_per_block, max(1, N // 2))
    ipb = images_per_block
    n_blocks = pl.cdiv(N, ipb)
    Npad = n_blocks * ipb

    # --- input: NCHW -> NHWC, spatial zero-pad, batch pad to a block multiple ---
    x = jnp.transpose(x_nchw, (0, 2, 3, 1))                       # (N, H, W, Cin)
    xp = jnp.pad(x, ((0, Npad - N), (P, P), (P, P), (0, 0)))      # (Npad, Hp, Wp, Cin)

    # --- fold conv bias + BatchNorm2d (inference) into weights / shifts ---
    eps = 1e-5
    s1 = g1 / jnp.sqrt(rv1 + eps)
    sh1 = (b1 - rm1) * s1 + be1
    s2 = g2 / jnp.sqrt(rv2 + eps)
    sh2 = (b2 - rm2) * s2 + be2

    # conv weight (Cout, Cin, KH, KW) -> (KH*KW, Cin, Cout), scale folded per out column
    w1_mat = jnp.transpose(w1, (2, 3, 1, 0)).reshape(KH * KW, Cin, Cout) * s1[None, None, :]
    w1_mat = jnp.pad(w1_mat, ((0, 0), (0, 0), (0, Cpad - Cout))).astype(compute_dtype)
    # 1x1 attn weight (Cout, Cout, 1, 1) -> (in, out), scale folded per out column
    w2_mat = jnp.transpose(w2[:, :, 0, 0], (1, 0)) * s2[None, :]
    w2_mat = jnp.pad(w2_mat, ((0, Cpad - Cout), (0, Cpad - Cout))).astype(compute_dtype)
    # both BN shifts packed into one (2, Cpad) operand
    shifts = jnp.stack([jnp.pad(sh1, (0, Cpad - Cout)),
                        jnp.pad(sh2, (0, Cpad - Cout))]).astype(jnp.float32)

    rows_per_block = ipb * HW
    kernel = functools.partial(_conv2d_attn_kernel,
                               ksize_h=KH, ksize_w=KW, ho=Ho, wo=Wo)

    out = pl.pallas_call(
        kernel,
        out_shape=jax.ShapeDtypeStruct((Npad * HW, Cpad), jnp.float32),
        grid_spec=pltpu.PrefetchScalarGridSpec(
            num_scalar_prefetch=0,
            grid=(n_blocks,),
            in_specs=[
                pl.BlockSpec((ipb, Hp, Wp, Cin), lambda i: (i, 0, 0, 0)),   # input block
                pl.BlockSpec((KH * KW, Cin, Cpad), lambda i: (0, 0, 0)),    # conv weight
                pl.BlockSpec((Cpad, Cpad), lambda i: (0, 0)),               # 1x1 weight
                pl.BlockSpec((2, Cpad), lambda i: (0, 0)),                  # BN shifts
            ],
            out_specs=pl.BlockSpec((rows_per_block, Cpad), lambda i: (i, 0)),
        ),
        compiler_params=pltpu.CompilerParams(
            dimension_semantics=("parallel",),
            vmem_limit_bytes=32 * 1024 * 1024),
    )(xp, w1_mat, w2_mat, shifts)

    # --- glue: drop channel/batch padding, back to NCHW ---
    out = out.reshape(Npad, Ho, Wo, Cpad)[:N, :, :, :Cout]
    return jnp.transpose(out, (0, 3, 1, 2))


def _reference_jax(x_nchw, params, *, kernel_size, padding, eps=1e-5):
    """Plain-JAX reference mirroring the PyTorch forward (BN in eval mode)."""
    (w1, b1, g1, be1, rm1, rv1, w2, b2, g2, be2, rm2, rv2) = params

    def conv_bn(x, w, b, g, be, rm, rv, pad):
        y = lax.conv_general_dilated(
            x, w, window_strides=(1, 1), padding=[(pad, pad), (pad, pad)],
            dimension_numbers=("NCHW", "OIHW", "NCHW"))
        y = y + b[None, :, None, None]
        y = (y - rm[None, :, None, None]) / jnp.sqrt(rv[None, :, None, None] + eps)
        y = y * g[None, :, None, None] + be[None, :, None, None]
        return y

    y = jax.nn.relu(conv_bn(x_nchw, w1, b1, g1, be1, rm1, rv1, padding))
    a = jax.nn.sigmoid(conv_bn(y, w2, b2, g2, be2, rm2, rv2, 0))
    return y * a


def _init_params(key, in_channels, out_channels, kernel_size):
    ks = jax.random.split(key, 8)
    w1 = 0.1 * jax.random.normal(ks[0], (out_channels, in_channels, kernel_size, kernel_size), jnp.float32)
    b1 = 0.1 * jax.random.normal(ks[1], (out_channels,), jnp.float32)
    g1 = 1.0 + 0.05 * jax.random.normal(ks[2], (out_channels,), jnp.float32)
    be1 = 0.05 * jax.random.normal(ks[3], (out_channels,), jnp.float32)
    rm1 = 0.05 * jax.random.normal(ks[4], (out_channels,), jnp.float32)
    rv1 = jnp.abs(1.0 + 0.05 * jax.random.normal(ks[5], (out_channels,), jnp.float32))
    w2 = 0.1 * jax.random.normal(ks[6], (out_channels, out_channels, 1, 1), jnp.float32)
    b2 = 0.1 * jax.random.normal(ks[7], (out_channels,), jnp.float32)
    # deterministic (non-trivial) BN stats for the attn branch
    g2 = 1.0 + 0.02 * jnp.arange(out_channels, dtype=jnp.float32)
    be2 = 0.01 * jnp.arange(out_channels, dtype=jnp.float32)
    rm2 = 0.03 * jnp.arange(out_channels, dtype=jnp.float32)
    rv2 = 1.0 + 0.01 * jnp.arange(out_channels, dtype=jnp.float32)
    return (w1, b1, g1, be1, rm1, rv1, w2, b2, g2, be2, rm2, rv2)


if __name__ == "__main__":
    key = jax.random.PRNGKey(0)
    kx, kp = jax.random.split(key)

    N, Cin, H, W = 2, 4, 16, 16
    Cout, K, P = 8, 3, 1

    x = jax.random.normal(kx, (N, Cin, H, W), jnp.float32)
    params = _init_params(kp, Cin, Cout, K)

    fn = jax.jit(functools.partial(conv2d_attn_pallas, kernel_size=K, padding=P))
    out = jax.block_until_ready(fn(x, params))

    ref = _reference_jax(x, params, kernel_size=K, padding=P)
    assert out.shape == (N, Cout, H, W), out.shape
    # bf16 MXU operands + approximate-reciprocal sigmoid -> slightly looser tolerance
    max_err = float(jnp.max(jnp.abs(out - ref)))
    assert jnp.allclose(out, ref, atol=3e-2, rtol=3e-2), max_err

    print("KERNEL_OK")
</pallas_src>

<mosaic_0001>
module attributes {stable_mosaic.version = 11 : i64} {
  func.func @_conv2d_attn_kernel(%arg0: i32, %arg1: memref<1x18x18x4xf32, #tpu.memory_space<vmem>>, %arg2: memref<9x4x128xbf16, #tpu.memory_space<vmem>>, %arg3: memref<128x128xbf16, #tpu.memory_space<vmem>>, %arg4: memref<2x128xf32, #tpu.memory_space<vmem>>, %arg5: memref<256x128xf32, #tpu.memory_space<vmem>>) attributes {dimension_semantics = [#tpu.dimension_semantics<parallel>], iteration_bounds = array<i64: 2>, scalar_prefetch = 0 : i64, scratch_operands = 0 : i64, tpu.core_type = #tpu.core_type<tc>, window_params = [{transform_indices = @transform_0, window_bounds = array<i64: 1, 18, 18, 4>}, {pipeline_mode = #tpu.pipeline_mode<synchronous>, transform_indices = @transform_1, window_bounds = array<i64: 9, 4, 128>}, {pipeline_mode = #tpu.pipeline_mode<synchronous>, transform_indices = @transform_2, window_bounds = array<i64: 128, 128>}, {pipeline_mode = #tpu.pipeline_mode<synchronous>, transform_indices = @transform_3, window_bounds = array<i64: 2, 128>}, {transform_indices = @transform_4, window_bounds = array<i64: 256, 128>}]} {
    %cst = arith.constant 0.000000e+00 : f32
    %0 = vector.broadcast %cst : f32 to vector<256x128xf32>
    %c0 = arith.constant 0 : index
    %c0_0 = arith.constant 0 : index
    %c0_1 = arith.constant 0 : index
    %c0_2 = arith.constant 0 : index
    %1 = vector.load %arg1[%c0, %c0_0, %c0_1, %c0_2] : memref<1x18x18x4xf32, #tpu.memory_space<vmem>>, vector<1x16x16x4xf32>
    %2 = vector.shape_cast %1 : vector<1x16x16x4xf32> to vector<256x4xf32>
    %3 = arith.truncf %2 : vector<256x4xf32> to vector<256x4xbf16>
    %c0_3 = arith.constant 0 : index
    %c0_4 = arith.constant 0 : index
    %c0_5 = arith.constant 0 : index
    %4 = vector.load %arg2[%c0_3, %c0_4, %c0_5] : memref<9x4x128xbf16, #tpu.memory_space<vmem>>, vector<1x4x128xbf16>
    %5 = vector.shape_cast %4 : vector<1x4x128xbf16> to vector<4x128xbf16>
    %cst_6 = arith.constant dense<0.000000e+00> : vector<256x128xf32>
    %6 = tpu.matmul %3, %5, %cst_6 {dimension_numbers = #tpu.dot_dimension_numbers<[1], [0], [0], [1], [0, 0, 1, 1], [], []>} : vector<256x4xbf16>, vector<4x128xbf16>, vector<256x128xf32> -> vector<256x128xf32>
    %7 = arith.addf %0, %6 : vector<256x128xf32>
    %c0_7 = arith.constant 0 : index
    %c0_8 = arith.constant 0 : index
    %c1 = arith.constant 1 : index
    %c0_9 = arith.constant 0 : index
    %8 = vector.load %arg1[%c0_7, %c0_8, %c1, %c0_9] : memref<1x18x18x4xf32, #tpu.memory_space<vmem>>, vector<1x16x16x4xf32>
    %9 = vector.shape_cast %8 : vector<1x16x16x4xf32> to vector<256x4xf32>
    %10 = arith.truncf %9 : vector<256x4xf32> to vector<256x4xbf16>
    %c1_10 = arith.constant 1 : index
    %c0_11 = arith.constant 0 : index
    %c0_12 = arith.constant 0 : index
    %11 = vector.load %arg2[%c1_10, %c0_11, %c0_12] : memref<9x4x128xbf16, #tpu.memory_space<vmem>>, vector<1x4x128xbf16>
    %12 = vector.shape_cast %11 : vector<1x4x128xbf16> to vector<4x128xbf16>
    %cst_13 = arith.constant dense<0.000000e+00> : vector<256x128xf32>
    %13 = tpu.matmul %10, %12, %cst_13 {dimension_numbers = #tpu.dot_dimension_numbers<[1], [0], [0], [1], [0, 0, 1, 1], [], []>} : vector<256x4xbf16>, vector<4x128xbf16>, vector<256x128xf32> -> vector<256x128xf32>
    %14 = arith.addf %7, %13 : vector<256x128xf32>
    %c0_14 = arith.constant 0 : index
    %c0_15 = arith.constant 0 : index
    %c2 = arith.constant 2 : index
    %c0_16 = arith.constant 0 : index
    %15 = vector.load %arg1[%c0_14, %c0_15, %c2, %c0_16] : memref<1x18x18x4xf32, #tpu.memory_space<vmem>>, vector<1x16x16x4xf32>
    %16 = vector.shape_cast %15 : vector<1x16x16x4xf32> to vector<256x4xf32>
    %17 = arith.truncf %16 : vector<256x4xf32> to vector<256x4xbf16>
    %c2_17 = arith.constant 2 : index
    %c0_18 = arith.constant 0 : index
    %c0_19 = arith.constant 0 : index
    %18 = vector.load %arg2[%c2_17, %c0_18, %c0_19] : memref<9x4x128xbf16, #tpu.memory_space<vmem>>, vector<1x4x128xbf16>
    %19 = vector.shape_cast %18 : vector<1x4x128xbf16> to vector<4x128xbf16>
    %cst_20 = arith.constant dense<0.000000e+00> : vector<256x128xf32>
    %20 = tpu.matmul %17, %19, %cst_20 {dimension_numbers = #tpu.dot_dimension_numbers<[1], [0], [0], [1], [0, 0, 1, 1], [], []>} : vector<256x4xbf16>, vector<4x128xbf16>, vector<256x128xf32> -> vector<256x128xf32>
    %21 = arith.addf %14, %20 : vector<256x128xf32>
    %c0_21 = arith.constant 0 : index
    %c1_22 = arith.constant 1 : index
    %c0_23 = arith.constant 0 : index
    %c0_24 = arith.constant 0 : index
    %22 = vector.load %arg1[%c0_21, %c1_22, %c0_23, %c0_24] : memref<1x18x18x4xf32, #tpu.memory_space<vmem>>, vector<1x16x16x4xf32>
    %23 = vector.shape_cast %22 : vector<1x16x16x4xf32> to vector<256x4xf32>
    %24 = arith.truncf %23 : vector<256x4xf32> to vector<256x4xbf16>
    %c3 = arith.constant 3 : index
    %c0_25 = arith.constant 0 : index
    %c0_26 = arith.constant 0 : index
    %25 = vector.load %arg2[%c3, %c0_25, %c0_26] : memref<9x4x128xbf16, #tpu.memory_space<vmem>>, vector<1x4x128xbf16>
    %26 = vector.shape_cast %25 : vector<1x4x128xbf16> to vector<4x128xbf16>
    %cst_27 = arith.constant dense<0.000000e+00> : vector<256x128xf32>
    %27 = tpu.matmul %24, %26, %cst_27 {dimension_numbers = #tpu.dot_dimension_numbers<[1], [0], [0], [1], [0, 0, 1, 1], [], []>} : vector<256x4xbf16>, vector<4x128xbf16>, vector<256x128xf32> -> vector<256x128xf32>
    %28 = arith.addf %21, %27 : vector<256x128xf32>
    %c0_28 = arith.constant 0 : index
    %c1_29 = arith.constant 1 : index
    %c1_30 = arith.constant 1 : index
    %c0_31 = arith.constant 0 : index
    %29 = vector.load %arg1[%c0_28, %c1_29, %c1_30, %c0_31] : memref<1x18x18x4xf32, #tpu.memory_space<vmem>>, vector<1x16x16x4xf32>
    %30 = vector.shape_cast %29 : vector<1x16x16x4xf32> to vector<256x4xf32>
    %31 = arith.truncf %30 : vector<256x4xf32> to vector<256x4xbf16>
    %c4 = arith.constant 4 : index
    %c0_32 = arith.constant 0 : index
    %c0_33 = arith.constant 0 : index
    %32 = vector.load %arg2[%c4, %c0_32, %c0_33] : memref<9x4x128xbf16, #tpu.memory_space<vmem>>, vector<1x4x128xbf16>
    %33 = vector.shape_cast %32 : vector<1x4x128xbf16> to vector<4x128xbf16>
    %cst_34 = arith.constant dense<0.000000e+00> : vector<256x128xf32>
    %34 = tpu.matmul %31, %33, %cst_34 {dimension_numbers = #tpu.dot_dimension_numbers<[1], [0], [0], [1], [0, 0, 1, 1], [], []>} : vector<256x4xbf16>, vector<4x128xbf16>, vector<256x128xf32> -> vector<256x128xf32>
    %35 = arith.addf %28, %34 : vector<256x128xf32>
    %c0_35 = arith.constant 0 : index
    %c1_36 = arith.constant 1 : index
    %c2_37 = arith.constant 2 : index
    %c0_38 = arith.constant 0 : index
    %36 = vector.load %arg1[%c0_35, %c1_36, %c2_37, %c0_38] : memref<1x18x18x4xf32, #tpu.memory_space<vmem>>, vector<1x16x16x4xf32>
    %37 = vector.shape_cast %36 : vector<1x16x16x4xf32> to vector<256x4xf32>
    %38 = arith.truncf %37 : vector<256x4xf32> to vector<256x4xbf16>
    %c5 = arith.constant 5 : index
    %c0_39 = arith.constant 0 : index
    %c0_40 = arith.constant 0 : index
    %39 = vector.load %arg2[%c5, %c0_39, %c0_40] : memref<9x4x128xbf16, #tpu.memory_space<vmem>>, vector<1x4x128xbf16>
    %40 = vector.shape_cast %39 : vector<1x4x128xbf16> to vector<4x128xbf16>
    %cst_41 = arith.constant dense<0.000000e+00> : vector<256x128xf32>
    %41 = tpu.matmul %38, %40, %cst_41 {dimension_numbers = #tpu.dot_dimension_numbers<[1], [0], [0], [1], [0, 0, 1, 1], [], []>} : vector<256x4xbf16>, vector<4x128xbf16>, vector<256x128xf32> -> vector<256x128xf32>
    %42 = arith.addf %35, %41 : vector<256x128xf32>
    %c0_42 = arith.constant 0 : index
    %c2_43 = arith.constant 2 : index
    %c0_44 = arith.constant 0 : index
    %c0_45 = arith.constant 0 : index
    %43 = vector.load %arg1[%c0_42, %c2_43, %c0_44, %c0_45] : memref<1x18x18x4xf32, #tpu.memory_space<vmem>>, vector<1x16x16x4xf32>
    %44 = vector.shape_cast %43 : vector<1x16x16x4xf32> to vector<256x4xf32>
    %45 = arith.truncf %44 : vector<256x4xf32> to vector<256x4xbf16>
    %c6 = arith.constant 6 : index
    %c0_46 = arith.constant 0 : index
    %c0_47 = arith.constant 0 : index
    %46 = vector.load %arg2[%c6, %c0_46, %c0_47] : memref<9x4x128xbf16, #tpu.memory_space<vmem>>, vector<1x4x128xbf16>
    %47 = vector.shape_cast %46 : vector<1x4x128xbf16> to vector<4x128xbf16>
    %cst_48 = arith.constant dense<0.000000e+00> : vector<256x128xf32>
    %48 = tpu.matmul %45, %47, %cst_48 {dimension_numbers = #tpu.dot_dimension_numbers<[1], [0], [0], [1], [0, 0, 1, 1], [], []>} : vector<256x4xbf16>, vector<4x128xbf16>, vector<256x128xf32> -> vector<256x128xf32>
    %49 = arith.addf %42, %48 : vector<256x128xf32>
    %c0_49 = arith.constant 0 : index
    %c2_50 = arith.constant 2 : index
    %c1_51 = arith.constant 1 : index
    %c0_52 = arith.constant 0 : index
    %50 = vector.load %arg1[%c0_49, %c2_50, %c1_51, %c0_52] : memref<1x18x18x4xf32, #tpu.memory_space<vmem>>, vector<1x16x16x4xf32>
    %51 = vector.shape_cast %50 : vector<1x16x16x4xf32> to vector<256x4xf32>
    %52 = arith.truncf %51 : vector<256x4xf32> to vector<256x4xbf16>
    %c7 = arith.constant 7 : index
    %c0_53 = arith.constant 0 : index
    %c0_54 = arith.constant 0 : index
    %53 = vector.load %arg2[%c7, %c0_53, %c0_54] : memref<9x4x128xbf16, #tpu.memory_space<vmem>>, vector<1x4x128xbf16>
    %54 = vector.shape_cast %53 : vector<1x4x128xbf16> to vector<4x128xbf16>
    %cst_55 = arith.constant dense<0.000000e+00> : vector<256x128xf32>
    %55 = tpu.matmul %52, %54, %cst_55 {dimension_numbers = #tpu.dot_dimension_numbers<[1], [0], [0], [1], [0, 0, 1, 1], [], []>} : vector<256x4xbf16>, vector<4x128xbf16>, vector<256x128xf32> -> vector<256x128xf32>
    %56 = arith.addf %49, %55 : vector<256x128xf32>
    %c0_56 = arith.constant 0 : index
    %c2_57 = arith.constant 2 : index
    %c2_58 = arith.constant 2 : index
    %c0_59 = arith.constant 0 : index
    %57 = vector.load %arg1[%c0_56, %c2_57, %c2_58, %c0_59] : memref<1x18x18x4xf32, #tpu.memory_space<vmem>>, vector<1x16x16x4xf32>
    %58 = vector.shape_cast %57 : vector<1x16x16x4xf32> to vector<256x4xf32>
    %59 = arith.truncf %58 : vector<256x4xf32> to vector<256x4xbf16>
    %c8 = arith.constant 8 : index
    %c0_60 = arith.constant 0 : index
    %c0_61 = arith.constant 0 : index
    %60 = vector.load %arg2[%c8, %c0_60, %c0_61] : memref<9x4x128xbf16, #tpu.memory_space<vmem>>, vector<1x4x128xbf16>
    %61 = vector.shape_cast %60 : vector<1x4x128xbf16> to vector<4x128xbf16>
    %cst_62 = arith.constant dense<0.000000e+00> : vector<256x128xf32>
    %62 = tpu.matmul %59, %61, %cst_62 {dimension_numbers = #tpu.dot_dimension_numbers<[1], [0], [0], [1], [0, 0, 1, 1], [], []>} : vector<256x4xbf16>, vector<4x128xbf16>, vector<256x128xf32> -> vector<256x128xf32>
    %63 = arith.addf %56, %62 : vector<256x128xf32>
    %c0_63 = arith.constant 0 : index
    %c0_64 = arith.constant 0 : index
    %64 = vector.load %arg4[%c0_63, %c0_64] : memref<2x128xf32, #tpu.memory_space<vmem>>, vector<1x128xf32>
    %65 = vector.broadcast %64 : vector<1x128xf32> to vector<256x128xf32>
    %66 = arith.addf %63, %65 : vector<256x128xf32>
    %cst_65 = arith.constant 0.000000e+00 : f32
    %67 = vector.broadcast %cst_65 : f32 to vector<256x128xf32>
    %68 = arith.maximumf %66, %67 : vector<256x128xf32>
    %69 = arith.truncf %68 : vector<256x128xf32> to vector<256x128xbf16>
    %c0_66 = arith.constant 0 : index
    %c0_67 = arith.constant 0 : index
    %70 = vector.load %arg3[%c0_66, %c0_67] : memref<128x128xbf16, #tpu.memory_space<vmem>>, vector<128x128xbf16>
    %cst_68 = arith.constant dense<0.000000e+00> : vector<256x128xf32>
    %71 = tpu.matmul %69, %70, %cst_68 {dimension_numbers = #tpu.dot_dimension_numbers<[1], [0], [0], [1], [0, 0, 1, 1], [], []>} : vector<256x128xbf16>, vector<128x128xbf16>, vector<256x128xf32> -> vector<256x128xf32>
    %c1_69 = arith.constant 1 : index
    %c0_70 = arith.constant 0 : index
    %72 = vector.load %arg4[%c1_69, %c0_70] : memref<2x128xf32, #tpu.memory_space<vmem>>, vector<1x128xf32>
    %73 = vector.broadcast %72 : vector<1x128xf32> to vector<256x128xf32>
    %74 = arith.addf %71, %73 : vector<256x128xf32>
    %cst_71 = arith.constant 0.000000e+00 : f32
    %75 = vector.broadcast %cst_71 : f32 to vector<256x128xf32>
    %76 = arith.subf %75, %74 : vector<256x128xf32>
    %77 = math.exp %76 : vector<256x128xf32>
    %cst_72 = arith.constant 1.000000e+00 : f32
    %78 = vector.broadcast %cst_72 : f32 to vector<256x128xf32>
    %79 = arith.addf %78, %77 : vector<256x128xf32>
    %80 = tpu.reciprocal %79 {approx = true} : vector<256x128xf32> -> vector<256x128xf32>
    %81 = arith.mulf %68, %80 : vector<256x128xf32>
    %c0_73 = arith.constant 0 : index
    %c0_74 = arith.constant 0 : index
    %82 = vector.load %arg5[%c0_73, %c0_74] : memref<256x128xf32, #tpu.memory_space<vmem>>, vector<256x128xf32>
    tpu.vector_store %arg5[%c0_73, %c0_74], %81 {strides = array<i32>} : memref<256x128xf32, #tpu.memory_space<vmem>>, vector<256x128xf32>,
    return
  }
  func.func @transform_0(%arg0: i32) -> (i32, i32, i32, i32) {
    %c0_i32 = arith.constant 0 : i32
    %c0_i32_0 = arith.constant 0 : i32
    %c0_i32_1 = arith.constant 0 : i32
    %c0_i32_2 = arith.constant 0 : i32
    return %arg0, %c0_i32, %c0_i32_0, %c0_i32_1 : i32, i32, i32, i32
  }
  func.func @transform_1(%arg0: i32) -> (i32, i32, i32) {
    %c0_i32 = arith.constant 0 : i32
    %c0_i32_0 = arith.constant 0 : i32
    %c0_i32_1 = arith.constant 0 : i32
    %c0_i32_2 = arith.constant 0 : i32
    return %c0_i32, %c0_i32_0, %c0_i32_1 : i32, i32, i32
  }
  func.func @transform_2(%arg0: i32) -> (i32, i32) {
    %c0_i32 = arith.constant 0 : i32
    %c0_i32_0 = arith.constant 0 : i32
    %c0_i32_1 = arith.constant 0 : i32
    return %c0_i32, %c0_i32_0 : i32, i32
  }
  func.func @transform_3(%arg0: i32) -> (i32, i32) {
    %c0_i32 = arith.constant 0 : i32
    %c0_i32_0 = arith.constant 0 : i32
    %c0_i32_1 = arith.constant 0 : i32
    return %c0_i32, %c0_i32_0 : i32, i32
  }
  func.func @transform_4(%arg0: i32) -> (i32, i32) {
    %c0_i32 = arith.constant 0 : i32
    %c0_i32_0 = arith.constant 0 : i32
    return %arg0, %c0_i32 : i32, i32
  }
}

</mosaic_0001>

<bundles_post_ra>
// kernel: conv2d_attn_pallas.1
= control target key start
LH: loop header
LB: loop body
LE: loop exit
PB: predicated region body
PF: predicated region fallthrough
CT: control target
= control target key end

     0   :  { %s4718_s15 = smov 0   ;;  %s5719_s0 = inlined_call_operand.vmem [shape: f32[2,18,18,4], index: 0, kind: input, shape index: {}]   ;;  %s5720_s1 = inlined_call_operand.vmem [shape: bf16[9,4,128], index: 1, kind: input, shape index: {}]   ;;  %s5721_s2 = inlined_call_operand.vmem [shape: bf16[128,128], index: 2, kind: input, shape index: {}]   ;;  %s5722_s3 = inlined_call_operand.vmem [shape: f32[2,128], index: 3, kind: input, shape index: {}]   ;;  %s5723_s4 = inlined_call_operand.vmem [shape: f32[512,128], index: 4, kind: output, shape index: {}]  }
   0x1 LB: > { %s4724_s16 = sadd.s32 4294967295, %s4691_s15   ;;  %p3384_p0 = scmp.ge.s32.totalorder %s4691_s15, 1  ;;  %s4691_s15 = sphi %s4718_s15, %s14_s15  }
   0x2   : > { %p162_p1 = scmp.lt.s32.totalorder %s4691_s15, 3 }
   0x4   : > { %p163_p2 = pnand %p3384_p0, %p162_p1 }
   0x5   : > { %vm348_vm0 = vcmask (!%p163_p2), 1041408   ;;  %v3519_v0 = vld [vmem:[%s5720_s1 + $0x8] sm:$0x3] (!%p163_p2)  ;;  %v3388_v1 = vld [vmem:[%s5720_s1 + $0x2] sm:$0x3] (!%p163_p2)  ;;  %p188_p3 = scmp.lt.s32.totalorder (!%p163_p2), %s4724_s16, 1 }
   0x6   : > { %166 = sbr.rel (%p163_p2) target bundleno = 810 (0x32a), region = 36  ;;  %4535 = vmatprep.subr.msk.bf16.mxu0 (!%p163_p2), %vm348_vm0, %v3519_v0  ;;  %4531 = vmatprep.subr.msk.bf16.mxu1 (!%p163_p2), %vm348_vm0, %v3388_v1  ;;  %v1413_v2 = vsel (!%p163_p2), %vm348_vm0, %v3519_v0, 0  ;;  %v350_v3 = vsel (!%p163_p2), %vm348_vm0, %v3388_v1, 0  ;;  %v3568_v4 = vld [vmem:[%s5720_s1 + $0xa] sm:$0x3] (!%p163_p2)  ;;  %vm299_vm1 = vcmask (!%p163_p2), 31744  }
   0x7   : > { %4058 = vmatpush3.bf16.msra.mxu0 (!%p163_p2), %v1413_v2  ;;  %3922 = vmatpush3.bf16.msra.mxu1 (!%p163_p2), %v350_v3  ;;  %v248_v5 = vld [vmem:[%s5720_s1] sm:$0x3] (!%p163_p2)  ;;  %v1707_v17 = vsel (!%p163_p2), %vm348_vm0, %v3568_v4, 0  ;;  %v4773_v20 = vld [vmem:[%s5720_s1 + $0xc] sm:$0x3] (!%p163_p2)  ;;  %s3386_s10 = sshll.u32 (!%p163_p2), %s4724_s16, 5 }
   0x8   : > { %4536 = vmatprep.subr.msk.bf16.mxu0 (!%p163_p2), %vm348_vm0, %v3568_v4  ;;  %4532 = vmatprep.subr.msk.bf16.mxu1 (!%p163_p2), %vm348_vm0, %v248_v5  ;;  %v562_v19 = vsel (!%p163_p2), %vm348_vm0, %v248_v5, 0  ;;  %v4782_v21 = vld [vmem:[%s5720_s1 + $0x4] sm:$0x3] (!%p163_p2)  ;;  %p5582_p4 = scmp.lt.s32.totalorder (!%p163_p2), %s3386_s10, 63 }
   0xd   : > { %s189_s23 = scalar_select %p188_p3, %s4724_s16, 1 }
   0xe   : > { %s5766_s10 = smov (!%p5582_p4, %s3386_s10), 63 }
   0xf   : > { %s4540_s26 = smul.u32 432, %s189_s23  ;;  %s3387_s16 = sshll.u32 %s5766_s10, 3 }
  0x10   : > { %s5602_s14 = scalar_lea.vmem %s5723_s4, %s3387_s16 }
  0x11   : > { %s4751_s29 = scalar_lea.vmem %s5719_s0, %s4540_s26 }
  0x12   : > { %v249_v6 = vld [vmem:[%s4751_s29 + $0x1] sm:$0xff]  ;;  %v250_v7 = vld [vmem:[%s4751_s29 + $0x9] sm:$0xff]  ;;  %v3487_v8 = vld [vmem:[%s4751_s29 + $0x19] sm:$0xff] }
  0x13   : > { %v281_v9 = vpack.c.bf16 %v250_v7, %v249_v6  ;;  %v3488_v10 = vld [vmem:[%s4751_s29 + $0x21] sm:$0xff]  ;;  %v3489_v11 = vld [vmem:[%s4751_s29 + $0x31] sm:$0xff]  ;;  %v3490_v12 = vld [vmem:[%s4751_s29 + $0x39] sm:$0xff] }
  0x14   : > { %v1346_v13 = vpack.c.bf16 %v3488_v10, %v3487_v8  ;;  %v4759_v14 = vpack.c.bf16 %v3490_v12, %v3489_v11  ;;  %v3491_v15 = vld [vmem:[%s4751_s29 + $0x49] sm:$0xff]  ;;  %v3492_v16 = vld [vmem:[%s4751_s29 + $0x51] sm:$0xff]  ;;  %v3493_v22 = vld [vmem:[%s4751_s29 + $0x61] sm:$0xff] }
  0x15   : > { %3923 = vmatprep.mubr.msk.bf16.mxu1 %vm299_vm1, %v281_v9  ;;  %v4765_v18 = vpack.c.bf16 %v3492_v16, %v3491_v15  ;;  %v3494_v23 = vld [vmem:[%s4751_s29 + $0x69] sm:$0xff]  ;;  %v3495_v24 = vld [vmem:[%s4751_s29 + $0x79] sm:$0xff]  ;;  %v3496_v25 = vld [vmem:[%s4751_s29 + $0x81] sm:$0xff]  ;;  %v2002_v16 = vsel %vm348_vm0, %v4773_v20, 0 }
  0x16   : > { %4059 = vmatprep.mubr.msk.bf16.mxu0 %vm299_vm1, %v1346_v13  ;;  %3924 = vmatmul.mubr.msk.bf16.vlgmr.msra.gmra.mrb[0].mxu1 %vm299_vm1, %v1346_v13  ;;  %v4794_v26 = vpack.c.bf16 %v3494_v23, %v3493_v22  ;;  %v4796_v27 = vpack.c.bf16 %v3496_v25, %v3495_v24  ;;  %v3497_v28 = vld [vmem:[%s4751_s29 + $0x91] sm:$0xff]  ;;  %v3498_v29 = vld [vmem:[%s4751_s29 + $0x99] sm:$0xff]  ;;  %v3499_v30 = vld [vmem:[%s4751_s29 + $0xa9] sm:$0xff] }
  0x17   : > { %4060 = vmatmul.mubr.msk.bf16.vlgmr.msra.gmra.mrb[0].mxu0 %vm299_vm1, %v4759_v14  ;;  %3927 = vmatprep.mubr.msk.bf16.mxu1 %vm299_vm1, %v4759_v14  ;;  %v3500_v31 = vld [vmem:[%s4751_s29 + $0xb1] sm:$0xff]  ;;  %v4810_v32 = vpack.c.bf16 %v3498_v29, %v3497_v28  ;;  %v3501_v34 = vld [vmem:[%s4751_s29 + $0xc1] sm:$0xff]  ;;  %v3502_v35 = vld [vmem:[%s4751_s29 + $0xc9] sm:$0xff] }
  0x18   : > { %4092 = vmatpush3.bf16.msra.mxu0 %v1707_v17  ;;  %4063 = vmatprep.mubr.msk.bf16.mxu0 %vm299_vm1, %v4765_v18  ;;  %v4812_v33 = vpack.c.bf16 %v3500_v31, %v3499_v30  ;;  %v3503_v36 = vld [vmem:[%s4751_s29 + $0xd9] sm:$0xff]  ;;  %v3504_v37 = vld [vmem:[%s4751_s29 + $0xe1] sm:$0xff]  ;;  %v4826_v38 = vpack.c.bf16 %v3502_v35, %v3501_v34  ;;  %v3505_v40 = vld [vmem:[%s4751_s29 + $0xf1] sm:$0xff] }
  0x19   : > { %3956 = vmatpush3.bf16.msra.mxu1 %v562_v19  ;;  %4537 = vmatprep.subr.msk.bf16.mxu0 %vm348_vm0, %v4773_v20  ;;  %v4828_v39 = vpack.c.bf16 %v3504_v37, %v3503_v36  ;;  %v3506_v41 = vld [vmem:[%s4751_s29 + $0xf9] sm:$0xff]  ;;  %v3507_v42 = vld [vmem:[%s4751_s29 + $0x109] sm:$0xff]  ;;  %v3508_v43 = vld [vmem:[%s4751_s29 + $0x111] sm:$0xff]  ;;  %v824_v19 = vsel %vm348_vm0, %v4782_v21, 0 }
  0x1a   : > { %4533 = vmatprep.subr.msk.bf16.mxu1 %vm348_vm0, %v4782_v21  ;;  %v4842_v44 = vpack.c.bf16 %v3506_v41, %v3505_v40  ;;  %v4844_v45 = vpack.c.bf16 %v3508_v43, %v3507_v42  ;;  %v3509_v46 = vld [vmem:[%s4751_s29 + $0x121] sm:$0xff]  ;;  %v3510_v47 = vld [vmem:[%s4751_s29 + $0x129] sm:$0xff]  ;;  %v3511_v48 = vld [vmem:[%s4751_s29 + $0x139] sm:$0xff] }
  0x1b   : > { %v3512_v49 = vld [vmem:[%s4751_s29 + $0x141] sm:$0xff]  ;;  %v4858_v50 = vpack.c.bf16 %v3510_v47, %v3509_v46  ;;  %v3513_v52 = vld [vmem:[%s4751_s29 + $0x151] sm:$0xff]  ;;  %v3514_v53 = vld [vmem:[%s4751_s29 + $0x159] sm:$0xff] }
  0x1c   : > { %v4860_v51 = vpack.c.bf16 %v3512_v49, %v3511_v48  ;;  %v3515_v54 = vld [vmem:[%s4751_s29 + $0x169] sm:$0xff]  ;;  %v3516_v55 = vld [vmem:[%s4751_s29 + $0x171] sm:$0xff]  ;;  %v4874_v56 = vpack.c.bf16 %v3514_v53, %v3513_v52  ;;  %v3517_v58 = vld [vmem:[%s4751_s29 + $0x181] sm:$0xff] }
  0x1d   : > { %v4876_v57 = vpack.c.bf16 %v3516_v55, %v3515_v54  ;;  %v3518_v59 = vld [vmem:[%s4751_s29 + $0x189] sm:$0xff]  ;;  %v200_v60 = vld [vmem:[%s4751_s29] sm:$0xff]  ;;  %v202_v3 = vld [vmem:[%s4751_s29 + $0x18] sm:$0xff] }
  0x1e   : > { %3928 = vmatmul.mubr.msk.bf16.gmra.mrb[4].mxu1 %vm299_vm1, %v4765_v18  ;;  %v201_v61 = vld [vmem:[%s4751_s29 + $0x8] sm:$0xff]  ;;  %v3536_v62 = vld [vmem:[%s4751_s29 + $0x1a] sm:$0xff]  ;;  %v4892_v0 = vpack.c.bf16 %v3518_v59, %v3517_v58  ;;  %v3538_v5 = vld [vmem:[%s4751_s29 + $0x32] sm:$0xff] }
  0x1f   : > { %4064 = vmatmul.mubr.msk.bf16.gmra.mrb[4].mxu0 %vm299_vm1, %v4794_v26  ;;  %3931 = vmatprep.mubr.msk.bf16.mxu1 %vm299_vm1, %v4794_v26  ;;  %v3537_v63 = vld [vmem:[%s4751_s29 + $0x22] sm:$0xff]  ;;  %v232_v1 = vpack.c.bf16 %v201_v61, %v200_v60  ;;  %v3539_v6 = vld [vmem:[%s4751_s29 + $0x3a] sm:$0xff]  ;;  %v204_v7 = vld [vmem:[%s4751_s29 + $0x30] sm:$0xff] }
  0x20   : > { %4067 = vmatprep.mubr.msk.bf16.mxu0 %vm299_vm1, %v4796_v27  ;;  %v4894_v2 = vpack.c.bf16 %v3537_v63, %v3536_v62  ;;  %v203_v4 = vld [vmem:[%s4751_s29 + $0x20] sm:$0xff]  ;;  %v205_v8 = vld [vmem:[%s4751_s29 + $0x38] sm:$0xff]  ;;  %v3540_v9 = vld [vmem:[%s4751_s29 + $0x4a] sm:$0xff]  ;;  %v4913_v12 = vpack.c.bf16 %v3539_v6, %v3538_v5 }
  0x21   : > { %v3541_v10 = vld [vmem:[%s4751_s29 + $0x52] sm:$0xff]  ;;  %v4911_v11 = vpack.c.bf16 %v203_v4, %v202_v3  ;;  %v4915_v13 = vpack.c.bf16 %v205_v8, %v204_v7  ;;  %v206_v17 = vld [vmem:[%s4751_s29 + $0x48] sm:$0xff]  ;;  %v4940_v24 = vld [vmem:[%s5720_s1 + $0x6] sm:$0x3] }
  0x22   : > { %v4917_v15 = vpack.c.bf16 %v3541_v10, %v3540_v9  ;;  %v4929_v22 = vld [vmem:[%s5720_s1 + $0xe] sm:$0x3]  ;;  %v207_v20 = vld [vmem:[%s4751_s29 + $0x50] sm:$0xff]  ;;  %v3542_v23 = vld [vmem:[%s4751_s29 + $0x62] sm:$0xff] }
  0x23   : > { %v3543_v21 = vld [vmem:[%s4751_s29 + $0x6a] sm:$0xff]  ;;  %v208_v25 = vld [vmem:[%s4751_s29 + $0x60] sm:$0xff]  ;;  %v4951_v31 = vpack.c.bf16 %v207_v20, %v206_v17  ;;  %v210_v37 = vld [vmem:[%s4751_s29 + $0x78] sm:$0xff] }
  0x24   : > { %v209_v28 = vld [vmem:[%s4751_s29 + $0x68] sm:$0xff]  ;;  %v3544_v29 = vld [vmem:[%s4751_s29 + $0x7a] sm:$0xff]  ;;  %v4955_v34 = vpack.c.bf16 %v3543_v21, %v3542_v23  ;;  %v3546_v41 = vld [vmem:[%s4751_s29 + $0x92] sm:$0xff] }
  0x25   : > { %v3545_v30 = vld [vmem:[%s4751_s29 + $0x82] sm:$0xff]  ;;  %v4957_v35 = vpack.c.bf16 %v209_v28, %v208_v25  ;;  %v3547_v42 = vld [vmem:[%s4751_s29 + $0x9a] sm:$0xff]  ;;  %v212_v43 = vld [vmem:[%s4751_s29 + $0x90] sm:$0xff] }
  0x26   : > { %3932 = vmatmul.mubr.msk.bf16.gmra.mrb[8].mxu1 %vm299_vm1, %v4796_v27  ;;  %v4959_v36 = vpack.c.bf16 %v3545_v30, %v3544_v29  ;;  %v211_v40 = vld [vmem:[%s4751_s29 + $0x80] sm:$0xff]  ;;  %v213_v46 = vld [vmem:[%s4751_s29 + $0x98] sm:$0xff]  ;;  %v3548_v47 = vld [vmem:[%s4751_s29 + $0xaa] sm:$0xff]  ;;  %v4979_v52 = vpack.c.bf16 %v3547_v42, %v3546_v41 }
  0x27   : > { %4068 = vmatmul.mubr.msk.bf16.gmra.mrb[8].mxu0 %vm299_vm1, %v4810_v32  ;;  %3935 = vmatprep.mubr.msk.bf16.mxu1 %vm299_vm1, %v4810_v32  ;;  %v3549_v48 = vld [vmem:[%s4751_s29 + $0xb2] sm:$0xff]  ;;  %v4977_v49 = vpack.c.bf16 %v211_v40, %v210_v37  ;;  %v4981_v53 = vpack.c.bf16 %v213_v46, %v212_v43  ;;  %v214_v55 = vld [vmem:[%s4751_s29 + $0xa8] sm:$0xff]  ;;  %v216_v61 = vld [vmem:[%s4751_s29 + $0xc0] sm:$0xff] }
  0x28   : > { %4071 = vmatprep.mubr.msk.bf16.mxu0 %vm299_vm1, %v4812_v33  ;;  %v4983_v54 = vpack.c.bf16 %v3549_v48, %v3548_v47  ;;  %v215_v58 = vld [vmem:[%s4751_s29 + $0xb0] sm:$0xff]  ;;  %v3550_v59 = vld [vmem:[%s4751_s29 + $0xc2] sm:$0xff]  ;;  %v3552_v63 = vld [vmem:[%s4751_s29 + $0xda] sm:$0xff] }
  0x29   : > { %v3551_v60 = vld [vmem:[%s4751_s29 + $0xca] sm:$0xff]  ;;  %v5001_v3 = vpack.c.bf16 %v215_v58, %v214_v55  ;;  %v218_v7 = vld [vmem:[%s4751_s29 + $0xd8] sm:$0xff]  ;;  %v219_v8 = vld [vmem:[%s4751_s29 + $0xe0] sm:$0xff] }
  0x2a   : > { %v217_v62 = vld [vmem:[%s4751_s29 + $0xc8] sm:$0xff]  ;;  %v5003_v4 = vpack.c.bf16 %v3551_v60, %v3550_v59  ;;  %v3554_v9 = vld [vmem:[%s4751_s29 + $0xf2] sm:$0xff]  ;;  %v3555_v10 = vld [vmem:[%s4751_s29 + $0xfa] sm:$0xff]  ;;  %v5025_v23 = vpack.c.bf16 %v219_v8, %v218_v7 }
  0x2b   : > { %v5005_v5 = vpack.c.bf16 %v217_v62, %v216_v61  ;;  %v221_v17 = vld [vmem:[%s4751_s29 + $0xf8] sm:$0xff]  ;;  %v5027_v21 = vpack.c.bf16 %v3555_v10, %v3554_v9  ;;  %v222_v29 = vld [vmem:[%s4751_s29 + $0x108] sm:$0xff]  ;;  %v223_v30 = vld [vmem:[%s4751_s29 + $0x110] sm:$0xff] }
  0x2c   : > { %v3557_v20 = vld [vmem:[%s4751_s29 + $0x112] sm:$0xff]  ;;  %v3558_v37 = vld [vmem:[%s4751_s29 + $0x122] sm:$0xff]  ;;  %v3559_v40 = vld [vmem:[%s4751_s29 + $0x12a] sm:$0xff]  ;;  %v5049_v47 = vpack.c.bf16 %v223_v30, %v222_v29 }
  0x2d   : > { %v224_v41 = vld [vmem:[%s4751_s29 + $0x120] sm:$0xff]  ;;  %v225_v42 = vld [vmem:[%s4751_s29 + $0x128] sm:$0xff]  ;;  %v5051_v48 = vpack.c.bf16 %v3559_v40, %v3558_v37  ;;  %v226_v59 = vld [vmem:[%s4751_s29 + $0x138] sm:$0xff] }
  0x2e   : > { %3936 = vmatmul.mubr.msk.bf16.gmra.mrb[12].mxu1 %vm299_vm1, %v4812_v33  ;;  %v3560_v43 = vld [vmem:[%s4751_s29 + $0x13a] sm:$0xff]  ;;  %v3561_v46 = vld [vmem:[%s4751_s29 + $0x142] sm:$0xff]  ;;  %v5053_v55 = vpack.c.bf16 %v225_v42, %v224_v41  ;;  %v3562_v61 = vld [vmem:[%s4751_s29 + $0x152] sm:$0xff] }
  0x2f   : > { %4072 = vmatmul.mubr.msk.bf16.gmra.mrb[12].mxu0 %vm299_vm1, %v4826_v38  ;;  %3939 = vmatprep.mubr.msk.bf16.mxu1 %vm299_vm1, %v4826_v38  ;;  %v5055_v58 = vpack.c.bf16 %v3561_v46, %v3560_v43  ;;  %v227_v60 = vld [vmem:[%s4751_s29 + $0x140] sm:$0xff]  ;;  %v3564_v7 = vld [vmem:[%s4751_s29 + $0x16a] sm:$0xff]  ;;  %v3565_v8 = vld [vmem:[%s4751_s29 + $0x172] sm:$0xff]  ;;  %v2296_v46 = vsel %vm348_vm0, %v4929_v22, 0 }
  0x30   : > { %4075 = vmatprep.mubr.msk.bf16.mxu0 %vm299_vm1, %v4828_v39  ;;  %v3563_v62 = vld [vmem:[%s4751_s29 + $0x15a] sm:$0xff]  ;;  %v5073_v9 = vpack.c.bf16 %v227_v60, %v226_v59  ;;  %v3566_v29 = vld [vmem:[%s4751_s29 + $0x182] sm:$0xff]  ;;  %v3567_v30 = vld [vmem:[%s4751_s29 + $0x18a] sm:$0xff]  ;;  %v1119_v59 = vsel %vm348_vm0, %v4940_v24, 0 }
  0x31   : > { %v5075_v10 = vpack.c.bf16 %v3563_v62, %v3562_v61  ;;  %v725_v37 = vld [vmem:[%s4751_s29 + $0x2] sm:$0xff]  ;;  %v726_v40 = vld [vmem:[%s4751_s29 + $0xa] sm:$0xff]  ;;  %v5097_v42 = vpack.c.bf16 %v3567_v30, %v3566_v29  ;;  %v3615_v61 = vld [vmem:[%s4751_s29 + $0x198] sm:$0xff] }
  0x32   : > { %v757_v43 = vpack.c.bf16 %v726_v40, %v725_v37  ;;  %v3715_v60 = vld [vmem:[%s5720_s1 + $0x10] sm:$0x3]  ;;  %v3616_v62 = vld [vmem:[%s4751_s29 + $0x1a0] sm:$0xff] }
  0x33   : > { %v5347_v30 = vld [vmem:[%s5722_s3] ss:$0 sm:$0xff] }
  0x36   : > { %3940 = vmatmul.mubr.msk.bf16.gmra.mrb[16].mxu1 %vm299_vm1, %v4828_v39 }
  0x37   : > { %4076 = vmatmul.mubr.msk.bf16.gmra.mrb[16].mxu0 %vm299_vm1, %v4842_v44  ;;  %3943 = vmatprep.mubr.msk.bf16.mxu1 %vm299_vm1, %v4842_v44 }
  0x38   : > { %4079 = vmatprep.mubr.msk.bf16.mxu0 %vm299_vm1, %v4844_v45 }
  0x3e   : > { %3944 = vmatmul.mubr.msk.bf16.gmra.mrb[20].mxu1 %vm299_vm1, %v4844_v45 }
  0x3f   : > { %4080 = vmatmul.mubr.msk.bf16.gmra.mrb[20].mxu0 %vm299_vm1, %v4858_v50  ;;  %3947 = vmatprep.mubr.msk.bf16.mxu1 %vm299_vm1, %v4858_v50 }
  0x40   : > { %4083 = vmatprep.mubr.msk.bf16.mxu0 %vm299_vm1, %v4860_v51 }
  0x46   : > { %3948 = vmatmul.mubr.msk.bf16.gmra.mrb[24].mxu1 %vm299_vm1, %v4860_v51 }
  0x47   : > { %4084 = vmatmul.mubr.msk.bf16.gmra.mrb[24].mxu0 %vm299_vm1, %v4874_v56  ;;  %3951 = vmatprep.mubr.msk.bf16.mxu1 %vm299_vm1, %v4874_v56 }
  0x48   : > { %4087 = vmatprep.mubr.msk.bf16.mxu0 %vm299_vm1, %v4876_v57 }
  0x4e   : > { %3952 = vmatmul.mubr.msk.bf16.gmra.mrb[28].mxu1 %vm299_vm1, %v4876_v57 }
  0x4f   : > { %4088 = vmatmul.mubr.msk.bf16.gmra.mrb[28].mxu0 %vm299_vm1, %v4892_v0  ;;  %3957 = vmatprep.mubr.msk.bf16.mxu1 %vm299_vm1, %v232_v1  ;;  %v3553_v1 = vld [vmem:[%s4751_s29 + $0xe2] sm:$0xff] }
  0x50   : > { %4093 = vmatprep.mubr.msk.bf16.mxu0 %vm299_vm1, %v4894_v2  ;;  %v5007_v6 = vpack.c.bf16 %v3553_v1, %v3552_v63  ;;  %v228_v63 = vld [vmem:[%s4751_s29 + $0x150] sm:$0xff]  ;;  %v229_v1 = vld [vmem:[%s4751_s29 + $0x158] sm:$0xff] }
  0x56   : > { %3958 = vmatmul.mubr.msk.bf16.vlgmr.msra.gmra.mrb[0].mxu1 %vm299_vm1, %v4911_v11 }
  0x57   : > { %4094 = vmatmul.mubr.msk.bf16.vlgmr.msra.gmra.mrb[0].mxu0 %vm299_vm1, %v4913_v12  ;;  %3961 = vmatprep.mubr.msk.bf16.mxu1 %vm299_vm1, %v4915_v13 }
  0x58   : > { %4126 = vmatpush3.bf16.msra.mxu0 %v2002_v16  ;;  %4097 = vmatprep.mubr.msk.bf16.mxu0 %vm299_vm1, %v4917_v15  ;;  %v220_v16 = vld [vmem:[%s4751_s29 + $0xf0] sm:$0xff] }
  0x59   : > { %3990 = vmatpush3.bf16.msra.mxu1 %v824_v19  ;;  %4538 = vmatprep.subr.msk.bf16.mxu0 %vm348_vm0, %v4929_v22  ;;  %v3556_v19 = vld [vmem:[%s4751_s29 + $0x10a] sm:$0xff]  ;;  %v5029_v25 = vpack.c.bf16 %v221_v17, %v220_v16  ;;  %v5077_v16 = vpack.c.bf16 %v229_v1, %v228_v63  ;;  %v5079_v17 = vpack.c.bf16 %v3565_v8, %v3564_v7  ;;  %v2590_v1 = vsel %vm348_vm0, %v3715_v60, 0 }
  0x5a   : > { %4534 = vmatprep.subr.msk.bf16.mxu1 %vm348_vm0, %v4940_v24  ;;  %v5031_v28 = vpack.c.bf16 %v3557_v20, %v3556_v19  ;;  %v230_v19 = vld [vmem:[%s4751_s29 + $0x168] sm:$0xff]  ;;  %v231_v20 = vld [vmem:[%s4751_s29 + $0x170] sm:$0xff]  ;;  %v1950_v63 = vpack.c.bf16 %v3616_v62, %v3615_v61 }
  0x5b   : > { %v5095_v41 = vpack.c.bf16 %v231_v20, %v230_v19  ;;  %v3614_v22 = vld [vmem:[%s4751_s29 + $0x188] sm:$0xff] }
  0x5e   : > { %3962 = vmatmul.mubr.msk.bf16.gmra.mrb[4].mxu1 %vm299_vm1, %v4951_v31 }
  0x5f   : > { %4098 = vmatmul.mubr.msk.bf16.gmra.mrb[4].mxu0 %vm299_vm1, %v4955_v34  ;;  %3965 = vmatprep.mubr.msk.bf16.mxu1 %vm299_vm1, %v4957_v35 }
  0x60   : > { %4101 = vmatprep.mubr.msk.bf16.mxu0 %vm299_vm1, %v4959_v36 }
  0x66   : > { %3966 = vmatmul.mubr.msk.bf16.gmra.mrb[8].mxu1 %vm299_vm1, %v4977_v49 }
  0x67   : > { %4102 = vmatmul.mubr.msk.bf16.gmra.mrb[8].mxu0 %vm299_vm1, %v4979_v52  ;;  %3969 = vmatprep.mubr.msk.bf16.mxu1 %vm299_vm1, %v4981_v53 }
  0x68   : > { %4105 = vmatprep.mubr.msk.bf16.mxu0 %vm299_vm1, %v4983_v54 }
  0x6e   : > { %3970 = vmatmul.mubr.msk.bf16.gmra.mrb[12].mxu1 %vm299_vm1, %v5001_v3 }
  0x6f   : > { %4106 = vmatmul.mubr.msk.bf16.gmra.mrb[12].mxu0 %vm299_vm1, %v5003_v4  ;;  %3973 = vmatprep.mubr.msk.bf16.mxu1 %vm299_vm1, %v5005_v5 }
  0x70   : > { %4109 = vmatprep.mubr.msk.bf16.mxu0 %vm299_vm1, %v5007_v6 }
  0x76   : > { %3974 = vmatmul.mubr.msk.bf16.gmra.mrb[16].mxu1 %vm299_vm1, %v5025_v23 }
  0x77   : > { %4110 = vmatmul.mubr.msk.bf16.gmra.mrb[16].mxu0 %vm299_vm1, %v5027_v21  ;;  %3977 = vmatprep.mubr.msk.bf16.mxu1 %vm299_vm1, %v5029_v25 }
  0x78   : > { %4113 = vmatprep.mubr.msk.bf16.mxu0 %vm299_vm1, %v5031_v28 }
  0x7e   : > { %3978 = vmatmul.mubr.msk.bf16.gmra.mrb[20].mxu1 %vm299_vm1, %v5049_v47 }
  0x7f   : > { %4114 = vmatmul.mubr.msk.bf16.gmra.mrb[20].mxu0 %vm299_vm1, %v5051_v48  ;;  %3981 = vmatprep.mubr.msk.bf16.mxu1 %vm299_vm1, %v5053_v55 }
  0x80   : > { %4117 = vmatprep.mubr.msk.bf16.mxu0 %vm299_vm1, %v5055_v58 }
  0x86   : > { %3982 = vmatmul.mubr.msk.bf16.gmra.mrb[24].mxu1 %vm299_vm1, %v5073_v9 }
  0x87   : > { %4118 = vmatmul.mubr.msk.bf16.gmra.mrb[24].mxu0 %vm299_vm1, %v5075_v10  ;;  %3985 = vmatprep.mubr.msk.bf16.mxu1 %vm299_vm1, %v5077_v16 }
  0x88   : > { %4121 = vmatprep.mubr.msk.bf16.mxu0 %vm299_vm1, %v5079_v17 }
  0x8e   : > { %3986 = vmatmul.mubr.msk.bf16.gmra.mrb[28].mxu1 %vm299_vm1, %v5095_v41 }
  0x8f   : > { %4122 = vmatmul.mubr.msk.bf16.gmra.mrb[28].mxu0 %vm299_vm1, %v5097_v42  ;;  %3991 = vmatprep.mubr.msk.bf16.mxu1 %vm299_vm1, %v757_v43 }
  0x90   : > { %4127 = vmatprep.mubr.msk.bf16.mxu0 %vm299_vm1, %v4915_v13 }
  0x96   : > { %3992 = vmatmul.mubr.msk.bf16.vlgmr.msra.gmra.mrb[0].mxu1 %vm299_vm1, %v4894_v2  ;;  %v3613_v2 = vld [vmem:[%s4751_s29 + $0x180] sm:$0xff] }
  0x97   : > { %4128 = vmatmul.mubr.msk.bf16.vlgmr.msra.gmra.mrb[0].mxu0 %vm299_vm1, %v4951_v31  ;;  %3995 = vmatprep.mubr.msk.bf16.mxu1 %vm299_vm1, %v4913_v12  ;;  %v1949_v24 = vpack.c.bf16 %v3614_v22, %v3613_v2 }
  0x98   : > { %4160 = vmatpush3.bf16.msra.mxu0 %v2296_v46  ;;  %4131 = vmatprep.mubr.msk.bf16.mxu0 %vm299_vm1, %v4957_v35 }
  0x99   : > { %4024 = vmatpush3.bf16.msra.mxu1 %v1119_v59  ;;  %4539 = vmatprep.subr.msk.bf16.mxu0 %vm348_vm0, %v3715_v60 }
  0x9e   : > { %3996 = vmatmul.mubr.msk.bf16.gmra.mrb[4].mxu1 %vm299_vm1, %v4917_v15 }
  0x9f   : > { %4132 = vmatmul.mubr.msk.bf16.gmra.mrb[4].mxu0 %vm299_vm1, %v4977_v49  ;;  %3999 = vmatprep.mubr.msk.bf16.mxu1 %vm299_vm1, %v4955_v34 }
  0xa0   : > { %4135 = vmatprep.mubr.msk.bf16.mxu0 %vm299_vm1, %v4981_v53 }
  0xa6   : > { %4000 = vmatmul.mubr.msk.bf16.gmra.mrb[8].mxu1 %vm299_vm1, %v4959_v36 }
  0xa7   : > { %4136 = vmatmul.mubr.msk.bf16.gmra.mrb[8].mxu0 %vm299_vm1, %v5001_v3  ;;  %4003 = vmatprep.mubr.msk.bf16.mxu1 %vm299_vm1, %v4979_v52 }
  0xa8   : > { %4139 = vmatprep.mubr.msk.bf16.mxu0 %vm299_vm1, %v5005_v5 }
  0xae   : > { %4004 = vmatmul.mubr.msk.bf16.gmra.mrb[12].mxu1 %vm299_vm1, %v4983_v54 }
  0xaf   : > { %4140 = vmatmul.mubr.msk.bf16.gmra.mrb[12].mxu0 %vm299_vm1, %v5025_v23  ;;  %4007 = vmatprep.mubr.msk.bf16.mxu1 %vm299_vm1, %v5003_v4 }
  0xb0   : > { %4143 = vmatprep.mubr.msk.bf16.mxu0 %vm299_vm1, %v5029_v25 }
  0xb6   : > { %4008 = vmatmul.mubr.msk.bf16.gmra.mrb[16].mxu1 %vm299_vm1, %v5007_v6 }
  0xb7   : > { %4144 = vmatmul.mubr.msk.bf16.gmra.mrb[16].mxu0 %vm299_vm1, %v5049_v47  ;;  %4011 = vmatprep.mubr.msk.bf16.mxu1 %vm299_vm1, %v5027_v21 }
  0xb8   : > { %4147 = vmatprep.mubr.msk.bf16.mxu0 %vm299_vm1, %v5053_v55 }
  0xbe   : > { %4012 = vmatmul.mubr.msk.bf16.gmra.mrb[20].mxu1 %vm299_vm1, %v5031_v28 }
  0xbf   : > { %4148 = vmatmul.mubr.msk.bf16.gmra.mrb[20].mxu0 %vm299_vm1, %v5073_v9  ;;  %4015 = vmatprep.mubr.msk.bf16.mxu1 %vm299_vm1, %v5051_v48 }
  0xc0   : > { %4151 = vmatprep.mubr.msk.bf16.mxu0 %vm299_vm1, %v5077_v16 }
  0xc6   : > { %4016 = vmatmul.mubr.msk.bf16.gmra.mrb[24].mxu1 %vm299_vm1, %v5055_v58 }
  0xc7   : > { %4152 = vmatmul.mubr.msk.bf16.gmra.mrb[24].mxu0 %vm299_vm1, %v5095_v41  ;;  %4019 = vmatprep.mubr.msk.bf16.mxu1 %vm299_vm1, %v5075_v10 }
  0xc8   : > { %4155 = vmatprep.mubr.msk.bf16.mxu0 %vm299_vm1, %v1949_v24 }
  0xce   : > { %4020 = vmatmul.mubr.msk.bf16.gmra.mrb[28].mxu1 %vm299_vm1, %v5079_v17 }
  0xcf   : > { %4156 = vmatmul.mubr.msk.bf16.gmra.mrb[28].mxu0 %vm299_vm1, %v1950_v63  ;;  %4025 = vmatprep.mubr.msk.bf16.mxu1 %vm299_vm1, %v4911_v11 }
  0xd0   : > { %4161 = vmatprep.mubr.msk.bf16.mxu0 %vm299_vm1, %v4759_v14  ;;  %v3664_v14 = vld [vmem:[%s4751_s29 + $0x199] sm:$0xff] }
  0xd6   : > { %4026 = vmatmul.mubr.msk.bf16.vlgmr.msra.gmra.mrb[0].mxu1 %vm299_vm1, %v4915_v13 }
  0xd7   : > { %4162 = vmatmul.mubr.msk.bf16.vlgmr.msra.gmra.mrb[0].mxu0 %vm299_vm1, %v4765_v18  ;;  %4029 = vmatprep.mubr.msk.bf16.mxu1 %vm299_vm1, %v4951_v31  ;;  %v3665_v18 = vld [vmem:[%s4751_s29 + $0x1a1] sm:$0xff] }
  0xd8   : > { %4194 = vmatpush3.bf16.msra.mxu0 %v2590_v1  ;;  %4165 = vmatprep.mubr.msk.bf16.mxu0 %vm299_vm1, %v4794_v26  ;;  %v2244_v26 = vpack.c.bf16 %v3665_v18, %v3664_v14 }
  0xde   : > { %4030 = vmatmul.mubr.msk.bf16.gmra.mrb[4].mxu1 %vm299_vm1, %v4957_v35 }
  0xdf   : > { %4166 = vmatmul.mubr.msk.bf16.gmra.mrb[4].mxu0 %vm299_vm1, %v4796_v27  ;;  %4033 = vmatprep.mubr.msk.bf16.mxu1 %vm299_vm1, %v4977_v49  ;;  %v4549_v27 = vld [vmem:[%s5721_s2] sm:$0xff]  }
  0xe0   : > { %4169 = vmatprep.mubr.msk.bf16.mxu0 %vm299_vm1, %v4810_v32  ;;  %4227 = vmatprep.subr.bf16.mxu1 %v4549_v27  ;;  %v4550_v32 = vld [vmem:[%s5721_s2 + $0x8] sm:$0xff]  }
  0xe1   : > { %4228 = vmatpush3.bf16.msra.mxu1 %v4549_v27 }
  0xe2   : > { %4229 = vmatprep.subr.bf16.mxu1 %v4550_v32 }
  0xe5   : > { %4230 = vmatpush3.bf16.msra.mxu1 %v4550_v32 }
  0xe6   : > { %4034 = vmatmul.mubr.msk.bf16.gmra.mrb[8].mxu1 %vm299_vm1, %v4981_v53 }
  0xe7   : > { %4170 = vmatmul.mubr.msk.bf16.gmra.mrb[8].mxu0 %vm299_vm1, %v4812_v33  ;;  %4037 = vmatprep.mubr.msk.bf16.mxu1 %vm299_vm1, %v5001_v3  ;;  %v4551_v33 = vld [vmem:[%s5721_s2 + $0x10] sm:$0xff]  }
  0xe8   : > { %4173 = vmatprep.mubr.msk.bf16.mxu0 %vm299_vm1, %v4826_v38  ;;  %4231 = vmatprep.subr.bf16.mxu1 %v4551_v33  ;;  %v3713_v38 = vld [vmem:[%s4751_s29 + $0x19a] sm:$0xff] }
  0xe9   : > { %4232 = vmatpush3.bf16.msra.mxu1 %v4551_v33 }
  0xee   : > { %4038 = vmatmul.mubr.msk.bf16.gmra.mrb[12].mxu1 %vm299_vm1, %v5005_v5 }
  0xef   : > { %4174 = vmatmul.mubr.msk.bf16.gmra.mrb[12].mxu0 %vm299_vm1, %v4828_v39  ;;  %4041 = vmatprep.mubr.msk.bf16.mxu1 %vm299_vm1, %v5025_v23  ;;  %v3714_v39 = vld [vmem:[%s4751_s29 + $0x1a2] sm:$0xff] }
  0xf0   : > { %4177 = vmatprep.mubr.msk.bf16.mxu0 %vm299_vm1, %v4842_v44  ;;  %v2538_v44 = vpack.c.bf16 %v3714_v39, %v3713_v38 }
  0xf6   : > { %4042 = vmatmul.mubr.msk.bf16.gmra.mrb[16].mxu1 %vm299_vm1, %v5029_v25 }
  0xf7   : > { %4178 = vmatmul.mubr.msk.bf16.gmra.mrb[16].mxu0 %vm299_vm1, %v4844_v45  ;;  %4045 = vmatprep.mubr.msk.bf16.mxu1 %vm299_vm1, %v5049_v47  ;;  %v4552_v45 = vld [vmem:[%s5721_s2 + $0x18] sm:$0xff]  }
  0xf8   : > { %4181 = vmatprep.mubr.msk.bf16.mxu0 %vm299_vm1, %v4858_v50  ;;  %4233 = vmatprep.subr.bf16.mxu1 %v4552_v45  ;;  %v4553_v50 = vld [vmem:[%s5721_s2 + $0x20] sm:$0xff]  }
  0xf9   : > { %4234 = vmatpush3.bf16.msra.mxu1 %v4552_v45 }
  0xfa   : > { %4235 = vmatprep.subr.bf16.mxu1 %v4553_v50 }
  0xfd   : > { %4236 = vmatpush3.bf16.msra.mxu1 %v4553_v50 }
  0xfe   : > { %4046 = vmatmul.mubr.msk.bf16.gmra.mrb[20].mxu1 %vm299_vm1, %v5053_v55 }
  0xff   : > { %4182 = vmatmul.mubr.msk.bf16.gmra.mrb[20].mxu0 %vm299_vm1, %v4860_v51  ;;  %4049 = vmatprep.mubr.msk.bf16.mxu1 %vm299_vm1, %v5073_v9  ;;  %v4554_v51 = vld [vmem:[%s5721_s2 + $0x28] sm:$0xff]  }
 0x100   : > { %4185 = vmatprep.mubr.msk.bf16.mxu0 %vm299_vm1, %v4874_v56  ;;  %4237 = vmatprep.subr.bf16.mxu1 %v4554_v51  ;;  %v4555_v56 = vld [vmem:[%s5721_s2 + $0x30] sm:$0xff]  }
 0x101   : > { %4238 = vmatpush3.bf16.msra.mxu1 %v4554_v51 }
 0x102   : > { %4239 = vmatprep.subr.bf16.mxu1 %v4555_v56 }
 0x105   : > { %4240 = vmatpush3.bf16.msra.mxu1 %v4555_v56 }
 0x106   : > { %4050 = vmatmul.mubr.msk.bf16.gmra.mrb[24].mxu1 %vm299_vm1, %v5077_v16 }
 0x107   : > { %4186 = vmatmul.mubr.msk.bf16.gmra.mrb[24].mxu0 %vm299_vm1, %v4876_v57  ;;  %4053 = vmatprep.mubr.msk.bf16.mxu1 %vm299_vm1, %v5095_v41  ;;  %v4556_v57 = vld [vmem:[%s5721_s2 + $0x38] sm:$0xff]  }
 0x108   : > { %4189 = vmatprep.mubr.msk.bf16.mxu0 %vm299_vm1, %v4892_v0  ;;  %4241 = vmatprep.subr.bf16.mxu1 %v4556_v57 }
 0x109   : > { %4242 = vmatpush3.bf16.msra.mxu1 %v4556_v57 }
 0x10e   : > { %4054 = vmatmul.mubr.msk.bf16.gmra.mrb[28].mxu1 %vm299_vm1, %v1949_v24 }
 0x10f   : > { %4190 = vmatmul.mubr.msk.bf16.gmra.mrb[28].mxu0 %vm299_vm1, %v2244_v26 }
 0x110   : > { %4195 = vmatprep.mubr.msk.bf16.mxu0 %vm299_vm1, %v4913_v12 }
 0x117   : > { %4196 = vmatmul.mubr.msk.bf16.vlgmr.msra.gmra.mrb[0].mxu0 %vm299_vm1, %v4917_v15 }
 0x118   : > { %4199 = vmatprep.mubr.msk.bf16.mxu0 %vm299_vm1, %v4955_v34 }
 0x11f   : > { %4200 = vmatmul.mubr.msk.bf16.gmra.mrb[4].mxu0 %vm299_vm1, %v4959_v36 }
 0x120   : > { %4203 = vmatprep.mubr.msk.bf16.mxu0 %vm299_vm1, %v4979_v52 }
 0x127   : > { %4204 = vmatmul.mubr.msk.bf16.gmra.mrb[8].mxu0 %vm299_vm1, %v4983_v54 }
 0x128   : > { %4207 = vmatprep.mubr.msk.bf16.mxu0 %vm299_vm1, %v5003_v4 }
 0x12f   : > { %4208 = vmatmul.mubr.msk.bf16.gmra.mrb[12].mxu0 %vm299_vm1, %v5007_v6 }
 0x130   : > { %4211 = vmatprep.mubr.msk.bf16.mxu0 %vm299_vm1, %v5027_v21 }
 0x137   : > { %4212 = vmatmul.mubr.msk.bf16.gmra.mrb[16].mxu0 %vm299_vm1, %v5031_v28 }
 0x138   : > { %4215 = vmatprep.mubr.msk.bf16.mxu0 %vm299_vm1, %v5051_v48 }
 0x13f   : > { %4216 = vmatmul.mubr.msk.bf16.gmra.mrb[20].mxu0 %vm299_vm1, %v5055_v58 }
 0x140   : > { %4219 = vmatprep.mubr.msk.bf16.mxu0 %vm299_vm1, %v5075_v10 }
 0x147   : > { %4220 = vmatmul.mubr.msk.bf16.gmra.mrb[24].mxu0 %vm299_vm1, %v5079_v17 }
 0x148   : > { %4223 = vmatprep.mubr.msk.bf16.mxu0 %vm299_vm1, %v5097_v42 }
 0x14f   : > { %4224 = vmatmul.mubr.msk.bf16.gmra.mrb[28].mxu0 %vm299_vm1, %v2538_v44 }
 0x1a9   : > { %v4027_v0 = vpop.f32.mrb[0].mxu1 }
 0x1aa   : > { %v1155_v11 = vpop.f32.mrb[1].mxu1 }
 0x1ab   : > { %v4028_v12 = vpop.f32.mrb[2].mxu1 }
 0x1ac   : > { %v1158_v13 = vpop.f32.mrb[3].mxu1 }
 0x1b1   : > { %v4031_v15 = vpop.f32.mrb[4].mxu1 }
 0x1b2   : > { %v1171_v31 = vpop.f32.mrb[5].mxu1 }
 0x1b3   : > { %v4032_v34 = vpop.f32.mrb[6].mxu1 }
 0x1b4   : > { %v1174_v35 = vpop.f32.mrb[7].mxu1 }
 0x1b9   : > { %v4035_v36 = vpop.f32.mrb[8].mxu1 }
 0x1ba   : > { %v5298_v49 = vpop.f32.mrb[9].mxu1 }
 0x1bb   : > { %v5300_v52 = vpop.f32.mrb[10].mxu1 }
 0x1bc   : > { %v5302_v53 = vpop.f32.mrb[11].mxu1 }
 0x1c1   : > { %v5304_v54 = vpop.f32.mrb[12].mxu1 }
 0x1c2   : > { %v5306_v3 = vpop.f32.mrb[13].mxu1 }
 0x1c3   : > { %v5308_v4 = vpop.f32.mrb[14].mxu1 }
 0x1c4   : > { %v5310_v5 = vpop.f32.mrb[15].mxu1 }
 0x1c9   : > { %v5312_v6 = vpop.f32.mrb[16].mxu1 }
 0x1ca   : > { %v5314_v23 = vpop.f32.mrb[17].mxu1 }
 0x1cb   : > { %v5316_v21 = vpop.f32.mrb[18].mxu1 }
 0x1cc   : > { %v5318_v25 = vpop.f32.mrb[19].mxu1 }
 0x1d1   : > { %v5320_v28 = vpop.f32.mrb[20].mxu1 }
 0x1d2   : > { %v5322_v47 = vpop.f32.mrb[21].mxu1 }
 0x1d3   : > { %v5324_v48 = vpop.f32.mrb[22].mxu1 }
 0x1d4   : > { %v5326_v55 = vpop.f32.mrb[23].mxu1 }
 0x1d9   : > { %v5328_v58 = vpop.f32.mrb[24].mxu1 }
 0x1da   : > { %v5330_v7 = vpop.f32.mrb[25].mxu1 }
 0x1db   : > { %v5332_v8 = vpop.f32.mrb[26].mxu1 }
 0x1dc   : > { %v5334_v9 = vpop.f32.mrb[27].mxu1 }
 0x1e1   : > { %v5336_v10 = vpop.f32.mrb[28].mxu1 }
 0x1e2   : > { %v5338_v16 = vpop.f32.mrb[29].mxu1 }
 0x1e3   : > { %v5340_v17 = vpop.f32.mrb[30].mxu1 }
 0x1e4   : > { %v5342_v19 = vpop.f32.mrb[31].mxu1 }
 0x1ea   : > { %v4197_v20 = vpop.f32.mrb[0].mxu0 }
 0x1eb   : > { %v4275_v29 = vadd.f32 %v4197_v20, %v4027_v0  ;;  %v2626_v37 = vpop.f32.mrb[1].mxu0 }
 0x1ec   : > { %v4276_v40 = vadd.f32 %v2626_v37, %v1155_v11  ;;  %v4198_v41 = vpop.f32.mrb[2].mxu0 }
 0x1ed   : > { %v4277_v42 = vadd.f32 %v4198_v41, %v4028_v12  ;;  %v2629_v43 = vpop.f32.mrb[3].mxu0  ;;  %v5353_v60 = vadd.f32 %v4275_v29, %v5347_v30 }
 0x1ee   : > { %v5350_v46 = vadd.f32 %v4276_v40, %v5347_v30  ;;  %v4278_v59 = vadd.f32 %v2629_v43, %v1158_v13 }
 0x1ef   : > { %v5356_v2 = vadd.f32 %v4277_v42, %v5347_v30  ;;  %v2824_v1 = vmax.f32 %v5353_v60, 0.0 }
 0x1f0   : > { %v5359_v22 = vadd.f32 %v4278_v59, %v5347_v30  ;;  %v2822_v61 = vmax.f32 %v5350_v46, 0.0 }
 0x1f1   : > { %v2825_v24 = vmax.f32 %v5356_v2, 0.0 }
 0x1f2   : > { %v2823_v62 = vmax.f32 %v5359_v22, 0.0  ;;  %v4201_v63 = vpop.f32.mrb[4].mxu0 }
 0x1f3   : > { %v4279_v14 = vadd.f32 %v4201_v63, %v4031_v15  ;;  %v2642_v18 = vpop.f32.mrb[5].mxu0  ;;  %v2855_v33 = vpack.c.bf16 %v2825_v24, %v2824_v1 }
 0x1f4   : > { %v4280_v26 = vadd.f32 %v2642_v18, %v1171_v31  ;;  %v4202_v27 = vpop.f32.mrb[6].mxu0  ;;  %v2854_v32 = vpack.c.bf16 %v2823_v62, %v2822_v61 }
 0x1f5   : > { %v4281_v38 = vadd.f32 %v4202_v27, %v4032_v34  ;;  %v2645_v39 = vpop.f32.mrb[7].mxu0  ;;  %v5377_v50 = vadd.f32 %v4279_v14, %v5347_v30 }
 0x1f6   : > { %v5374_v44 = vadd.f32 %v4280_v26, %v5347_v30  ;;  %v4282_v45 = vadd.f32 %v2645_v39, %v1174_v35  ;;  %4243 = vmatprep.mubr.bf16.mxu1 %v2854_v32 }
 0x1f7   : > { %v5380_v51 = vadd.f32 %v4281_v38, %v5347_v30  ;;  %4244 = vmatmul.mubr.bf16.vlgmr.msra.gmra.mrb[32].mxu1 %v2855_v33  ;;  %v2828_v13 = vmax.f32 %v5377_v50, 0.0 }
 0x1f8   : > { %v5383_v56 = vadd.f32 %v4282_v45, %v5347_v30  ;;  %v2826_v0 = vmax.f32 %v5374_v44, 0.0 }
 0x1f9   : > { %v2829_v57 = vmax.f32 %v5380_v51, 0.0 }
 0x1fa   : > { %v2827_v11 = vmax.f32 %v5383_v56, 0.0  ;;  %v4205_v12 = vpop.f32.mrb[8].mxu0 }
 0x1fb   : > { %v4283_v15 = vadd.f32 %v4205_v12, %v4035_v36  ;;  %v2658_v31 = vpop.f32.mrb[9].mxu0  ;;  %v2857_v40 = vpack.c.bf16 %v2829_v57, %v2828_v13 }
 0x1fc   : > { %v4284_v34 = vadd.f32 %v2658_v31, %v5298_v49  ;;  %v4206_v35 = vpop.f32.mrb[10].mxu0  ;;  %v2856_v20 = vpack.c.bf16 %v2827_v11, %v2826_v0 }
 0x1fd   : > { %v4285_v29 = vadd.f32 %v4206_v35, %v5300_v52  ;;  %v2661_v37 = vpop.f32.mrb[11].mxu0  ;;  %v5404_v49 = vadd.f32 %v4283_v15, %v5347_v30 }
 0x1fe   : > { %v5400_v41 = vadd.f32 %v4284_v34, %v5347_v30  ;;  %v4286_v36 = vadd.f32 %v2661_v37, %v5302_v53  ;;  %4247 = vmatprep.mubr.bf16.mxu1 %v2856_v20 }
 0x1ff   : > { %v5407_v42 = vadd.f32 %v4285_v29, %v5347_v30  ;;  %4248 = vmatmul.mubr.bf16.gmra.mrb[36].mxu1 %v2857_v40  ;;  %v2832_v53 = vmax.f32 %v5404_v49, 0.0 }
 0x200   : > { %v5410_v52 = vadd.f32 %v4286_v36, %v5347_v30  ;;  %v2830_v59 = vmax.f32 %v5400_v41, 0.0 }
 0x201   : > { %v2833_v43 = vmax.f32 %v5407_v42, 0.0 }
 0x202   : > { %v2831_v63 = vmax.f32 %v5410_v52, 0.0  ;;  %v4209_v14 = vpop.f32.mrb[12].mxu0 }
 0x203   : > { %v4287_v18 = vadd.f32 %v4209_v14, %v5304_v54  ;;  %v2674_v26 = vpop.f32.mrb[13].mxu0  ;;  %v2859_v45 = vpack.c.bf16 %v2833_v43, %v2832_v53 }
 0x204   : > { %v4288_v27 = vadd.f32 %v2674_v26, %v5306_v3  ;;  %v4210_v32 = vpop.f32.mrb[14].mxu0  ;;  %v2858_v33 = vpack.c.bf16 %v2831_v63, %v2830_v59 }
 0x205   : > { %v4289_v38 = vadd.f32 %v4210_v32, %v5308_v4  ;;  %v2677_v39 = vpop.f32.mrb[15].mxu0  ;;  %v5432_v3 = vadd.f32 %v4287_v18, %v5347_v30 }
 0x206   : > { %v5428_v12 = vadd.f32 %v4288_v27, %v5347_v30  ;;  %v4290_v54 = vadd.f32 %v2677_v39, %v5310_v5  ;;  %4251 = vmatprep.mubr.bf16.mxu1 %v2858_v33 }
 0x207   : > { %v5435_v15 = vadd.f32 %v4289_v38, %v5347_v30  ;;  %4252 = vmatmul.mubr.bf16.gmra.mrb[40].mxu1 %v2859_v45  ;;  %v5743_v5 = vmax.f32 %v5432_v3, 0.0 }
 0x208   : > { %v5438_v4 = vadd.f32 %v4290_v54, %v5347_v30  ;;  %v5742_v34 = vmax.f32 %v5428_v12, 0.0 }
 0x209   : > { %v5741_v31 = vmax.f32 %v5435_v15, 0.0 }
 0x20a   : > { %v5740_v35 = vmax.f32 %v5438_v4, 0.0  ;;  %v4213_v20 = vpop.f32.mrb[16].mxu0 }
 0x20b   : > { %v4291_v29 = vadd.f32 %v4213_v20, %v5312_v6  ;;  %v2690_v37 = vpop.f32.mrb[17].mxu0  ;;  %v2861_v27 = vpack.c.bf16 %v5741_v31, %v5743_v5 }
 0x20c   : > { %v4292_v40 = vadd.f32 %v2690_v37, %v5314_v23  ;;  %v4214_v36 = vpop.f32.mrb[18].mxu0  ;;  %v2860_v14 = vpack.c.bf16 %v5740_v35, %v5742_v34 }
 0x20d   : > { %v4293_v18 = vadd.f32 %v4214_v36, %v5316_v21  ;;  %v2693_v26 = vpop.f32.mrb[19].mxu0  ;;  %v5460_v23 = vadd.f32 %v4291_v29, %v5347_v30 }
 0x20e   : > { %v5456_v32 = vadd.f32 %v4292_v40, %v5347_v30  ;;  %v4294_v6 = vadd.f32 %v2693_v26, %v5318_v25  ;;  %4255 = vmatprep.mubr.bf16.mxu1 %v2860_v14 }
 0x20f   : > { %v5463_v33 = vadd.f32 %v4293_v18, %v5347_v30  ;;  %4256 = vmatmul.mubr.bf16.gmra.mrb[44].mxu1 %v2861_v27  ;;  %v5739_v25 = vmax.f32 %v5460_v23, 0.0 }
 0x210   : > { %v5466_v21 = vadd.f32 %v4294_v6, %v5347_v30  ;;  %v5726_v39 = vmax.f32 %v5456_v32, 0.0 }
 0x211   : > { %v5725_v38 = vmax.f32 %v5463_v33, 0.0 }
 0x212   : > { %v5724_v45 = vmax.f32 %v5466_v21, 0.0  ;;  %v4217_v54 = vpop.f32.mrb[20].mxu0 }
 0x213   : > { %v4295_v20 = vadd.f32 %v4217_v54, %v5320_v28  ;;  %v2706_v29 = vpop.f32.mrb[21].mxu0  ;;  %v2863_v26 = vpack.c.bf16 %v5725_v38, %v5739_v25 }
 0x214   : > { %v4296_v37 = vadd.f32 %v2706_v29, %v5322_v47  ;;  %v4218_v40 = vpop.f32.mrb[22].mxu0  ;;  %v2862_v36 = vpack.c.bf16 %v5724_v45, %v5726_v39 }
 0x215   : > { %v4297_v14 = vadd.f32 %v4218_v40, %v5324_v48  ;;  %v2709_v18 = vpop.f32.mrb[23].mxu0  ;;  %v5488_v47 = vadd.f32 %v4295_v20, %v5347_v30 }
 0x216   : > { %v5484_v27 = vadd.f32 %v4296_v37, %v5347_v30  ;;  %v4298_v28 = vadd.f32 %v2709_v18, %v5326_v55  ;;  %4259 = vmatprep.mubr.bf16.mxu1 %v2862_v36 }
 0x217   : > { %v5491_v6 = vadd.f32 %v4297_v14, %v5347_v30  ;;  %4260 = vmatmul.mubr.bf16.gmra.mrb[48].mxu1 %v2863_v26  ;;  %v5730_v55 = vmax.f32 %v5488_v47, 0.0 }
 0x218   : > { %v5494_v48 = vadd.f32 %v4298_v28, %v5347_v30  ;;  %v5729_v29 = vmax.f32 %v5484_v27, 0.0 }
 0x219   : > { %v5728_v54 = vmax.f32 %v5491_v6, 0.0 }
 0x21a   : > { %v5727_v37 = vmax.f32 %v5494_v48, 0.0  ;;  %v4221_v40 = vpop.f32.mrb[24].mxu0 }
 0x21b   : > { %v4299_v36 = vadd.f32 %v4221_v40, %v5328_v58  ;;  %v2722_v20 = vpop.f32.mrb[25].mxu0  ;;  %v2865_v38 = vpack.c.bf16 %v5728_v54, %v5730_v55 }
 0x21c   : > { %v4300_v18 = vadd.f32 %v2722_v20, %v5330_v7  ;;  %v4222_v14 = vpop.f32.mrb[26].mxu0  ;;  %v2864_v26 = vpack.c.bf16 %v5727_v37, %v5729_v29 }
 0x21d   : > { %v4301_v28 = vadd.f32 %v4222_v14, %v5332_v8  ;;  %v2725_v45 = vpop.f32.mrb[27].mxu0  ;;  %v5516_v7 = vadd.f32 %v4299_v36, %v5347_v30 }
 0x21e   : > { %v5512_v39 = vadd.f32 %v4300_v18, %v5347_v30  ;;  %v4302_v58 = vadd.f32 %v2725_v45, %v5334_v9  ;;  %4263 = vmatprep.mubr.bf16.mxu1 %v2864_v26 }
 0x21f   : > { %v5519_v40 = vadd.f32 %v4301_v28, %v5347_v30  ;;  %4264 = vmatmul.mubr.bf16.gmra.mrb[52].mxu1 %v2865_v38  ;;  %v5738_v9 = vmax.f32 %v5516_v7, 0.0 }
 0x220   : > { %v5522_v8 = vadd.f32 %v4302_v58, %v5347_v30  ;;  %v5735_v14 = vmax.f32 %v5512_v39, 0.0 }
 0x221   : > { %v5734_v20 = vmax.f32 %v5519_v40, 0.0 }
 0x222   : > { %v5731_v18 = vmax.f32 %v5522_v8, 0.0  ;;  %v4225_v37 = vpop.f32.mrb[28].mxu0 }
 0x223   : > { %v4303_v45 = vadd.f32 %v4225_v37, %v5336_v10  ;;  %v2738_v36 = vpop.f32.mrb[29].mxu0  ;;  %v2867_v29 = vpack.c.bf16 %v5734_v20, %v5738_v9 }
 0x224   : > { %v4304_v26 = vadd.f32 %v2738_v36, %v5338_v16  ;;  %v4226_v28 = vpop.f32.mrb[30].mxu0  ;;  %v2866_v38 = vpack.c.bf16 %v5731_v18, %v5735_v14 }
 0x225   : > { %v4305_v58 = vadd.f32 %v4226_v28, %v5340_v17  ;;  %v2741_v54 = vpop.f32.mrb[31].mxu0  ;;  %v5544_v16 = vadd.f32 %v4303_v45, %v5347_v30 }
 0x226   : > { %v5540_v55 = vadd.f32 %v4304_v26, %v5347_v30  ;;  %v4306_v10 = vadd.f32 %v2741_v54, %v5342_v19  ;;  %4267 = vmatprep.mubr.bf16.mxu1 %v2866_v38 }
 0x227   : > { %v5547_v37 = vadd.f32 %v4305_v58, %v5347_v30  ;;  %4268 = vmatmul.mubr.bf16.gmra.mrb[56].mxu1 %v2867_v29  ;;  %v5737_v18 = vmax.f32 %v5544_v16, 0.0 }
 0x228   : > { %v5550_v17 = vadd.f32 %v4306_v10, %v5347_v30  ;;  %v5733_v28 = vmax.f32 %v5540_v55, 0.0  ;;  %v5567_v30 = vld [vmem:[%s5722_s3 + $0x1] ss:$0 sm:$0xff] }
 0x229   : > { %v5736_v36 = vmax.f32 %v5547_v37, 0.0 }
 0x22a   : > { %v5732_v26 = vmax.f32 %v5550_v17, 0.0 }
 0x22b   : > { %v2869_v54 = vpack.c.bf16 %v5736_v36, %v5737_v18 }
 0x22c   : > { %v2868_v19 = vpack.c.bf16 %v5732_v26, %v5733_v28 }
 0x22e   : > { %4271 = vmatprep.mubr.bf16.mxu1 %v2868_v19 }
 0x22f   : > { %4272 = vmatmul.mubr.bf16.gmra.mrb[60].mxu1 %v2869_v54 }
 0x2ca   : > { %v4245_v29 = vpop.f32.mrb[32].mxu1 }
 0x2cb   : > { %v2982_v45 = vadd.f32 %v4245_v29, %v5567_v30  ;;  %v2973_v38 = vpop.f32.mrb[33].mxu1 }
 0x2cc   : > { %v2974_v58 = vadd.f32 %v5567_v30, %v2973_v38  ;;  %v4246_v10 = vpop.f32.mrb[34].mxu1 }
 0x2cd   : > { %v3102_v26 = vsub.f32 0.0, %v2982_v45  ;;  %v2985_v28 = vadd.f32 %v4246_v10, %v5567_v30  ;;  %v2976_v20 = vpop.f32.mrb[35].mxu1 }
 0x2ce   : > { %v3100_v14 = vsub.f32 0.0, %v2974_v58  ;;  %v2977_v19 = vadd.f32 %v5567_v30, %v2976_v20 }
 0x2cf   : > { %v3136_v54 = vmul.f32 1.442695, %v3102_v26  ;;  %v3103_v36 = vsub.f32 0.0, %v2985_v28 }
 0x2d0   : > { %v3132_v18 = vmul.f32 1.442695, %v3100_v14  ;;  %v3101_v9 = vsub.f32 0.0, %v2977_v19 }
 0x2d1   : > { %4557 = vpow2.f32 %v3136_v54  ;;  %v3138_v25 = vmul.f32 1.442695, %v3103_v36 }
 0x2d2   : > { %4559 = vpow2.f32 %v3132_v18  ;;  %v3134_v35 = vmul.f32 1.442695, %v3101_v9  ;;  %v4249_v29 = vpop.f32.mrb[36].mxu1 }
 0x2d3   : > { %4561 = vpow2.f32 %v3138_v25  ;;  %v2998_v38 = vadd.f32 %v4249_v29, %v5567_v30  ;;  %v2989_v45 = vpop.f32.mrb[37].mxu1 }
 0x2d4   : > { %4563 = vpow2.f32 %v3134_v35  ;;  %v2990_v10 = vadd.f32 %v5567_v30, %v2989_v45  ;;  %v4250_v58 = vpop.f32.mrb[38].mxu1 }
 0x2d5   : > { %v3106_v31 = vsub.f32 0.0, %v2998_v38  ;;  %v3001_v20 = vadd.f32 %v4250_v58, %v5567_v30  ;;  %v2992_v28 = vpop.f32.mrb[39].mxu1 }
 0x2d6   : > { %v3104_v14 = vsub.f32 0.0, %v2990_v10  ;;  %v2993_v26 = vadd.f32 %v5567_v30, %v2992_v28 }
 0x2d7   : > { %v3144_v36 = vmul.f32 1.442695, %v3106_v31  ;;  %v3107_v18 = vsub.f32 0.0, %v3001_v20 }
 0x2d8   : > { %v3140_v9 = vmul.f32 1.442695, %v3104_v14  ;;  %v3105_v19 = vsub.f32 0.0, %v2993_v26 }
 0x2d9   : > { %4565 = vpow2.f32 %v3144_v36  ;;  %v3146_v25 = vmul.f32 1.442695, %v3107_v18 }
 0x2da   : > { %4567 = vpow2.f32 %v3140_v9  ;;  %v3142_v35 = vmul.f32 1.442695, %v3105_v19  ;;  %v4253_v54 = vpop.f32.mrb[40].mxu1 }
 0x2db   : > { %v4558_v29 = vpop.eup %4557  ;;  %4569 = vpow2.f32 %v3146_v25  ;;  %v3014_v38 = vadd.f32 %v4253_v54, %v5567_v30  ;;  %v3005_v45 = vpop.f32.mrb[41].mxu1 }
 0x2dc   : > { %v4560_v58 = vpop.eup %4559  ;;  %v3198_v10 = vadd.f32 1.0, %v4558_v29  ;;  %4571 = vpow2.f32 %v3142_v35  ;;  %v3006_v31 = vadd.f32 %v5567_v30, %v3005_v45  ;;  %v4254_v20 = vpop.f32.mrb[42].mxu1 }
 0x2dd   : > { %v4562_v28 = vpop.eup %4561  ;;  %v3196_v14 = vadd.f32 1.0, %v4560_v58  ;;  %v3110_v26 = vsub.f32 0.0, %v3014_v38  ;;  %v3017_v36 = vadd.f32 %v4254_v20, %v5567_v30  ;;  %v3008_v18 = vpop.f32.mrb[43].mxu1 }
 0x2de   : > { %v4564_v9 = vpop.eup %4563  ;;  %4573 = vrcp.f32 %v3198_v10  ;;  %v3199_v19 = vadd.f32 1.0, %v4562_v28  ;;  %v3108_v25 = vsub.f32 0.0, %v3006_v31  ;;  %v3009_v35 = vadd.f32 %v5567_v30, %v3008_v18 }
 0x2df   : > { %4575 = vrcp.f32 %v3196_v14  ;;  %v3197_v54 = vadd.f32 1.0, %v4564_v9  ;;  %v3152_v29 = vmul.f32 1.442695, %v3110_v26  ;;  %v3111_v45 = vsub.f32 0.0, %v3017_v36 }
 0x2e0   : > { %4577 = vrcp.f32 %v3199_v19  ;;  %v3148_v34 = vmul.f32 1.442695, %v3108_v25  ;;  %v3109_v5 = vsub.f32 0.0, %v3009_v35 }
 0x2e1   : > { %4579 = vrcp.f32 %v3197_v54  ;;  %v3154_v38 = vmul.f32 1.442695, %v3111_v45 }
 0x2e2   : > { %4581 = vpow2.f32 %v3152_v29  ;;  %v3150_v58 = vmul.f32 1.442695, %v3109_v5  ;;  %v4257_v10 = vpop.f32.mrb[44].mxu1 }
 0x2e3   : > { %v4566_v31 = vpop.eup %4565  ;;  %4583 = vpow2.f32 %v3148_v34  ;;  %v3030_v20 = vadd.f32 %v4257_v10, %v5567_v30  ;;  %v3021_v28 = vpop.f32.mrb[45].mxu1 }
 0x2e4   : > { %v4568_v14 = vpop.eup %4567  ;;  %v3202_v26 = vadd.f32 1.0, %v4566_v31  ;;  %4585 = vpow2.f32 %v3154_v38  ;;  %v3022_v36 = vadd.f32 %v5567_v30, %v3021_v28  ;;  %v4258_v18 = vpop.f32.mrb[46].mxu1 }
 0x2e5   : > { %v4570_v9 = vpop.eup %4569  ;;  %v3200_v19 = vadd.f32 1.0, %v4568_v14  ;;  %4587 = vpow2.f32 %v3150_v58  ;;  %v3114_v25 = vsub.f32 0.0, %v3030_v20  ;;  %v3033_v35 = vadd.f32 %v4258_v18, %v5567_v30  ;;  %v3024_v5 = vpop.f32.mrb[47].mxu1 }
 0x2e6   : > { %v4572_v54 = vpop.eup %4571  ;;  %4589 = vrcp.f32 %v3202_v26  ;;  %v3203_v34 = vadd.f32 1.0, %v4570_v9  ;;  %v3112_v29 = vsub.f32 0.0, %v3022_v36  ;;  %v3025_v45 = vadd.f32 %v5567_v30, %v3024_v5 }
 0x2e7   : > { %4591 = vrcp.f32 %v3200_v19  ;;  %v3201_v10 = vadd.f32 1.0, %v4572_v54  ;;  %v3160_v38 = vmul.f32 1.442695, %v3114_v25  ;;  %v3115_v31 = vsub.f32 0.0, %v3033_v35 }
 0x2e8   : > { %v4574_v28 = vpop.eup %4573  ;;  %4593 = vrcp.f32 %v3203_v34  ;;  %v3156_v58 = vmul.f32 1.442695, %v3112_v29  ;;  %v3113_v20 = vsub.f32 0.0, %v3025_v45 }
 0x2e9   : > { %v4576_v14 = vpop.eup %4575  ;;  %v3262_v26 = vmul.f32 %v4574_v28, %v2824_v1  ;;  %4595 = vrcp.f32 %v3201_v10  ;;  %v3162_v36 = vmul.f32 1.442695, %v3115_v31 }
 0x2ea   : > { %v4578_v18 = vpop.eup %4577  ;;  %v3260_v9 = vmul.f32 %v4576_v14, %v2822_v61  ;;  %4597 = vpow2.f32 %v3160_v38  ;;  %v3158_v19 = vmul.f32 1.442695, %v3113_v20  ;;  %v4261_v25 = vpop.f32.mrb[48].mxu1 }
 0x2eb   : > { %v4580_v35 = vpop.eup %4579  ;;  %3294 = vst [vmem:[%s5602_s14 + $0x10] sm:$0xff] %v3262_v26  ;;  %v3263_v5 = vmul.f32 %v4578_v18, %v2825_v24  ;;  %4599 = vpow2.f32 %v3156_v58  ;;  %v3046_v60 = vadd.f32 %v4261_v25, %v5567_v30  ;;  %v3037_v1 = vpop.f32.mrb[49].mxu1 }
 0x2ec   : > { %v4582_v54 = vpop.eup %4581  ;;  %3292 = vst [vmem:[%s5602_s14] sm:$0xff] %v3260_v9  ;;  %v3261_v46 = vmul.f32 %v4580_v35, %v2823_v62  ;;  %4601 = vpow2.f32 %v3162_v36  ;;  %v3038_v61 = vadd.f32 %v5567_v30, %v3037_v1  ;;  %v4262_v34 = vpop.f32.mrb[50].mxu1 }
 0x2ed   : > { %v4584_v29 = vpop.eup %4583  ;;  %3295 = vst [vmem:[%s5602_s14 + $0x18] sm:$0xff] %v3263_v5  ;;  %v3206_v45 = vadd.f32 1.0, %v4582_v54  ;;  %4603 = vpow2.f32 %v3158_v19  ;;  %v3118_v2 = vsub.f32 0.0, %v3046_v60  ;;  %v3049_v24 = vadd.f32 %v4262_v34, %v5567_v30  ;;  %v3040_v10 = vpop.f32.mrb[51].mxu1 }
 0x2ee   : > { %v4586_v38 = vpop.eup %4585  ;;  %3293 = vst [vmem:[%s5602_s14 + $0x8] sm:$0xff] %v3261_v46  ;;  %v3204_v31 = vadd.f32 1.0, %v4584_v29  ;;  %v3116_v28 = vsub.f32 0.0, %v3038_v61  ;;  %v3041_v58 = vadd.f32 %v5567_v30, %v3040_v10 }
 0x2ef   : > { %v4588_v22 = vpop.eup %4587  ;;  %4605 = vrcp.f32 %v3206_v45  ;;  %v3207_v62 = vadd.f32 1.0, %v4586_v38  ;;  %v3168_v20 = vmul.f32 1.442695, %v3118_v2  ;;  %v3119_v14 = vsub.f32 0.0, %v3049_v24 }
 0x2f0   : > { %v4590_v26 = vpop.eup %4589  ;;  %4607 = vrcp.f32 %v3204_v31  ;;  %v3205_v36 = vadd.f32 1.0, %v4588_v22  ;;  %v3164_v18 = vmul.f32 1.442695, %v3116_v28  ;;  %v3117_v9 = vsub.f32 0.0, %v3041_v58 }
 0x2f1   : > { %v4592_v19 = vpop.eup %4591  ;;  %v3266_v25 = vmul.f32 %v4590_v26, %v2828_v13  ;;  %4609 = vrcp.f32 %v3207_v62  ;;  %v3170_v35 = vmul.f32 1.442695, %v3119_v14 }
 0x2f2   : > { %v4594_v5 = vpop.eup %4593  ;;  %v3264_v60 = vmul.f32 %v4592_v19, %v2826_v0  ;;  %4611 = vrcp.f32 %v3205_v36  ;;  %v3166_v1 = vmul.f32 1.442695, %v3117_v9  ;;  %v4265_v54 = vpop.f32.mrb[52].mxu1 }
 0x2f3   : > { %v4596_v46 = vpop.eup %4595  ;;  %3298 = vst [vmem:[%s5602_s14 + $0x30] sm:$0xff] %v3266_v25  ;;  %v3267_v61 = vmul.f32 %v4594_v5, %v2829_v57  ;;  %4613 = vpow2.f32 %v3168_v20  ;;  %v3062_v50 = vadd.f32 %v4265_v54, %v5567_v30  ;;  %v3053_v13 = vpop.f32.mrb[53].mxu1 }
 0x2f4   : > { %v4598_v34 = vpop.eup %4597  ;;  %3296 = vst [vmem:[%s5602_s14 + $0x20] sm:$0xff] %v3264_v60  ;;  %v3265_v44 = vmul.f32 %v4596_v46, %v2827_v11  ;;  %4615 = vpow2.f32 %v3164_v18  ;;  %v3054_v0 = vadd.f32 %v5567_v30, %v3053_v13  ;;  %v4266_v29 = vpop.f32.mrb[54].mxu1 }
 0x2f5   : > { %v4600_v45 = vpop.eup %4599  ;;  %3299 = vst [vmem:[%s5602_s14 + $0x38] sm:$0xff] %v3267_v61  ;;  %v3210_v2 = vadd.f32 1.0, %v4598_v34  ;;  %4617 = vpow2.f32 %v3170_v35  ;;  %v3122_v51 = vsub.f32 0.0, %v3062_v50  ;;  %v3065_v57 = vadd.f32 %v4266_v29, %v5567_v30  ;;  %v3056_v24 = vpop.f32.mrb[55].mxu1 }
 0x2f6   : > { %v4602_v10 = vpop.eup %4601  ;;  %3297 = vst [vmem:[%s5602_s14 + $0x28] sm:$0xff] %v3265_v44  ;;  %v3208_v38 = vadd.f32 1.0, %v4600_v45  ;;  %4619 = vpow2.f32 %v3166_v1  ;;  %v3120_v31 = vsub.f32 0.0, %v3054_v0  ;;  %v3057_v56 = vadd.f32 %v5567_v30, %v3056_v24 }
 0x2f7   : > { %v4604_v11 = vpop.eup %4603  ;;  %4621 = vrcp.f32 %v3210_v2  ;;  %v3211_v28 = vadd.f32 1.0, %v4602_v10  ;;  %v3176_v58 = vmul.f32 1.442695, %v3122_v51  ;;  %v3123_v22 = vsub.f32 0.0, %v3065_v57 }
 0x2f8   : > { %4623 = vrcp.f32 %v3208_v38  ;;  %v3209_v62 = vadd.f32 1.0, %v4604_v11  ;;  %v3172_v20 = vmul.f32 1.442695, %v3120_v31  ;;  %v3121_v14 = vsub.f32 0.0, %v3057_v56 }
 0x2f9   : > { %v4606_v26 = vpop.eup %4605  ;;  %4625 = vrcp.f32 %v3211_v28  ;;  %v3178_v36 = vmul.f32 1.442695, %v3123_v22  ;;  %v5745_v31 = vmax.f32 %v5432_v3, 0.0  ;;  %v5746_v22 = vmax.f32 %v5428_v12, 0.0 }
 0x2fa   : > { %v4608_v18 = vpop.eup %4607  ;;  %v3270_v9 = vmul.f32 %v4606_v26, %v2832_v53  ;;  %4627 = vrcp.f32 %v3209_v62  ;;  %v3174_v19 = vmul.f32 1.442695, %v3121_v14  ;;  %v4269_v25 = vpop.f32.mrb[56].mxu1  ;;  %v5748_v12 = vmax.f32 %v5438_v4, 0.0 }
 0x2fb   : > { %v4610_v35 = vpop.eup %4609  ;;  %v3268_v5 = vmul.f32 %v4608_v18, %v2830_v59  ;;  %4629 = vpow2.f32 %v3176_v58  ;;  %v3078_v60 = vadd.f32 %v4269_v25, %v5567_v30  ;;  %v3069_v1 = vpop.f32.mrb[57].mxu1  ;;  %v5747_v18 = vmax.f32 %v5435_v15, 0.0 }
 0x2fc   : > { %v4612_v54 = vpop.eup %4611  ;;  %3302 = vst [vmem:[%s5602_s14 + $0x50] sm:$0xff] %v3270_v9  ;;  %v3271_v46 = vmul.f32 %v4610_v35, %v2833_v43  ;;  %4631 = vpow2.f32 %v3172_v20  ;;  %v3070_v49 = vadd.f32 %v5567_v30, %v3069_v1  ;;  %v4270_v53 = vpop.f32.mrb[58].mxu1 }
 0x2fd   : > { %v4614_v61 = vpop.eup %4613  ;;  %3300 = vst [vmem:[%s5602_s14 + $0x40] sm:$0xff] %v3268_v5  ;;  %v3269_v41 = vmul.f32 %v4612_v54, %v2831_v63  ;;  %4633 = vpow2.f32 %v3178_v36  ;;  %v3126_v59 = vsub.f32 0.0, %v3078_v60  ;;  %v3081_v50 = vadd.f32 %v4270_v53, %v5567_v30  ;;  %v3072_v13 = vpop.f32.mrb[59].mxu1 }
 0x2fe   : > { %v4616_v34 = vpop.eup %4615  ;;  %3303 = vst [vmem:[%s5602_s14 + $0x58] sm:$0xff] %v3271_v46  ;;  %v3214_v44 = vadd.f32 1.0, %v4614_v61  ;;  %4635 = vpow2.f32 %v3174_v19  ;;  %v3124_v42 = vsub.f32 0.0, %v3070_v49  ;;  %v3073_v43 = vadd.f32 %v5567_v30, %v3072_v13 }
 0x2ff   : > { %v4618_v0 = vpop.eup %4617  ;;  %3301 = vst [vmem:[%s5602_s14 + $0x48] sm:$0xff] %v3269_v41  ;;  %v3212_v29 = vadd.f32 1.0, %v4616_v34  ;;  %v3127_v45 = vsub.f32 0.0, %v3081_v50  ;;  %v3184_v63 = vmul.f32 1.442695, %v3126_v59 }
 0x300   : > { %v4620_v2 = vpop.eup %4619  ;;  %4637 = vrcp.f32 %v3214_v44  ;;  %v3215_v52 = vadd.f32 1.0, %v4618_v0  ;;  %v3125_v51 = vsub.f32 0.0, %v3073_v43  ;;  %v3180_v10 = vmul.f32 1.442695, %v3124_v42 }
 0x301   : > { %v4622_v57 = vpop.eup %4621  ;;  %4639 = vrcp.f32 %v3212_v29  ;;  %v3213_v24 = vadd.f32 1.0, %v4620_v2  ;;  %v3186_v11 = vmul.f32 1.442695, %v3127_v45 }
 0x302   : > { %v4624_v38 = vpop.eup %4623  ;;  %v3274_v56 = vmul.f32 %v4622_v57, %v5745_v31  ;;  %4641 = vrcp.f32 %v3215_v52  ;;  %v4273_v28 = vpop.f32.mrb[60].mxu1  ;;  %v3182_v20 = vmul.f32 1.442695, %v3125_v51  ;;  %v5750_v52 = vmax.f32 %v5456_v32, 0.0 }
 0x303   : > { %v4626_v58 = vpop.eup %4625  ;;  %v3272_v62 = vmul.f32 %v4624_v38, %v5746_v22  ;;  %4643 = vrcp.f32 %v3213_v24  ;;  %v3094_v14 = vadd.f32 %v4273_v28, %v5567_v30  ;;  %v3085_v26 = vpop.f32.mrb[61].mxu1  ;;  %v5751_v57 = vmax.f32 %v5463_v33, 0.0 }
 0x304   : > { %v4628_v36 = vpop.eup %4627  ;;  %3306 = vst [vmem:[%s5602_s14 + $0x70] sm:$0xff] %v3274_v56  ;;  %v3275_v3 = vmul.f32 %v4626_v58, %v5747_v18  ;;  %4645 = vpow2.f32 %v3184_v63  ;;  %v3086_v9 = vadd.f32 %v5567_v30, %v3085_v26  ;;  %v4274_v19 = vpop.f32.mrb[62].mxu1  ;;  %v5754_v26 = vmax.f32 %v5484_v27, 0.0 }
 0x305   : > { %v4630_v25 = vpop.eup %4629  ;;  %3304 = vst [vmem:[%s5602_s14 + $0x60] sm:$0xff] %v3272_v62  ;;  %v3273_v35 = vmul.f32 %v4628_v36, %v5748_v12  ;;  %4647 = vpow2.f32 %v3180_v10  ;;  %v3130_v5 = vsub.f32 0.0, %v3094_v14  ;;  %v3097_v60 = vadd.f32 %v4274_v19, %v5567_v30  ;;  %v3088_v1 = vpop.f32.mrb[63].mxu1 }
 0x306   : > { %v4632_v54 = vpop.eup %4631  ;;  %3307 = vst [vmem:[%s5602_s14 + $0x78] sm:$0xff] %v3275_v3  ;;  %v3218_v46 = vadd.f32 1.0, %v4630_v25  ;;  %4649 = vpow2.f32 %v3186_v11  ;;  %v3128_v15 = vsub.f32 0.0, %v3086_v9  ;;  %v3089_v49 = vadd.f32 %v5567_v30, %v3088_v1 }
 0x307   : > { %v4634_v53 = vpop.eup %4633  ;;  %3305 = vst [vmem:[%s5602_s14 + $0x68] sm:$0xff] %v3273_v35  ;;  %v3216_v61 = vadd.f32 1.0, %v4632_v54  ;;  %4651 = vpow2.f32 %v3182_v20  ;;  %v3131_v41 = vsub.f32 0.0, %v3097_v60  ;;  %v3192_v50 = vmul.f32 1.442695, %v3130_v5 }
 0x308   : > { %v4636_v59 = vpop.eup %4635  ;;  %4653 = vrcp.f32 %v3218_v46  ;;  %v3219_v4 = vadd.f32 1.0, %v4634_v53  ;;  %v3129_v13 = vsub.f32 0.0, %v3089_v49  ;;  %v3188_v44 = vmul.f32 1.442695, %v3128_v15 }
 0x309   : > { %4655 = vrcp.f32 %v3216_v61  ;;  %v3217_v34 = vadd.f32 1.0, %v4636_v59  ;;  %v3194_v43 = vmul.f32 1.442695, %v3131_v41  ;;  %v5749_v30 = vmax.f32 %v5460_v23, 0.0 }
 0x30a   : > { %v4638_v42 = vpop.eup %4637  ;;  %4657 = vrcp.f32 %v3219_v4  ;;  %v3190_v45 = vmul.f32 1.442695, %v3129_v13  ;;  %v5752_v23 = vmax.f32 %v5466_v21, 0.0  ;;  %v5753_v21 = vmax.f32 %v5488_v47, 0.0 }
 0x30b   : > { %v4640_v0 = vpop.eup %4639  ;;  %v3278_v29 = vmul.f32 %v4638_v42, %v5749_v30  ;;  %4659 = vrcp.f32 %v3217_v34  ;;  %v5755_v3 = vmax.f32 %v5491_v6, 0.0  ;;  %v5756_v25 = vmax.f32 %v5494_v48, 0.0 }
 0x30c   : > { %v4642_v2 = vpop.eup %4641  ;;  %v3276_v63 = vmul.f32 %v4640_v0, %v5750_v52  ;;  %4661 = vpow2.f32 %v3192_v50  ;;  %v5757_v48 = vmax.f32 %v5516_v7, 0.0  ;;  %v5758_v53 = vmax.f32 %v5512_v39, 0.0 }
 0x30d   : > { %v4644_v51 = vpop.eup %4643  ;;  %3310 = vst [vmem:[%s5602_s14 + $0x90] sm:$0xff] %v3278_v29  ;;  %v3279_v24 = vmul.f32 %v4642_v2, %v5751_v57  ;;  %4663 = vpow2.f32 %v3188_v44  ;;  %v5759_v59 = vmax.f32 %v5519_v40, 0.0  ;;  %v5760_v50 = vmax.f32 %v5522_v8, 0.0 }
 0x30e   : > { %v4646_v10 = vpop.eup %4645  ;;  %3308 = vst [vmem:[%s5602_s14 + $0x80] sm:$0xff] %v3276_v63  ;;  %v3277_v38 = vmul.f32 %v4644_v51, %v5752_v23  ;;  %4665 = vpow2.f32 %v3194_v43  ;;  %v5761_v44 = vmax.f32 %v5544_v16, 0.0  ;;  %v5762_v43 = vmax.f32 %v5540_v55, 0.0 }
 0x30f   : > { %v4648_v31 = vpop.eup %4647  ;;  %3311 = vst [vmem:[%s5602_s14 + $0x98] sm:$0xff] %v3279_v24  ;;  %v3222_v56 = vadd.f32 1.0, %v4646_v10  ;;  %4667 = vpow2.f32 %v3190_v45  ;;  %v5763_v40 = vmax.f32 %v5547_v37, 0.0  ;;  %v5764_v8 = vmax.f32 %v5550_v17, 0.0 }
 0x310   : > { %v4650_v32 = vpop.eup %4649  ;;  %3309 = vst [vmem:[%s5602_s14 + $0x88] sm:$0xff] %v3277_v38  ;;  %v3220_v11 = vadd.f32 1.0, %v4648_v31 }
 0x311   : > { %v4652_v28 = vpop.eup %4651  ;;  %4669 = vrcp.f32 %v3222_v56  ;;  %v3223_v33 = vadd.f32 1.0, %v4650_v32 }
 0x312   : > { %v4654_v58 = vpop.eup %4653  ;;  %4671 = vrcp.f32 %v3220_v11  ;;  %v3221_v22 = vadd.f32 1.0, %v4652_v28 }
 0x313   : > { %v4656_v62 = vpop.eup %4655  ;;  %v3282_v20 = vmul.f32 %v4654_v58, %v5753_v21  ;;  %4673 = vrcp.f32 %v3223_v33 }
 0x314   : > { %v4658_v14 = vpop.eup %4657  ;;  %v3280_v36 = vmul.f32 %v4656_v62, %v5754_v26  ;;  %4675 = vrcp.f32 %v3221_v22 }
 0x315   : > { %v4660_v18 = vpop.eup %4659  ;;  %3314 = vst [vmem:[%s5602_s14 + $0xb0] sm:$0xff] %v3282_v20  ;;  %v3283_v9 = vmul.f32 %v4658_v14, %v5755_v3 }
 0x316   : > { %v4662_v19 = vpop.eup %4661  ;;  %3312 = vst [vmem:[%s5602_s14 + $0xa0] sm:$0xff] %v3280_v36  ;;  %v3281_v12 = vmul.f32 %v4660_v18, %v5756_v25 }
 0x317   : > { %v4664_v35 = vpop.eup %4663  ;;  %3315 = vst [vmem:[%s5602_s14 + $0xb8] sm:$0xff] %v3283_v9  ;;  %v3226_v47 = vadd.f32 1.0, %v4662_v19 }
 0x318   : > { %v4666_v5 = vpop.eup %4665  ;;  %3313 = vst [vmem:[%s5602_s14 + $0xa8] sm:$0xff] %v3281_v12  ;;  %v3224_v60 = vadd.f32 1.0, %v4664_v35 }
 0x319   : > { %v4668_v27 = vpop.eup %4667  ;;  %4677 = vrcp.f32 %v3226_v47  ;;  %v3227_v1 = vadd.f32 1.0, %v4666_v5 }
 0x31a   : > { %4679 = vrcp.f32 %v3224_v60  ;;  %v3225_v6 = vadd.f32 1.0, %v4668_v27 }
 0x31b   : > { %v4670_v54 = vpop.eup %4669  ;;  %4681 = vrcp.f32 %v3227_v1 }
 0x31c   : > { %v4672_v46 = vpop.eup %4671  ;;  %v3286_v15 = vmul.f32 %v4670_v54, %v5757_v48  ;;  %4683 = vrcp.f32 %v3225_v6 }
 0x31d   : > { %v4674_v49 = vpop.eup %4673  ;;  %v3284_v61 = vmul.f32 %v4672_v46, %v5758_v53 }
 0x31e   : > { %v4676_v41 = vpop.eup %4675  ;;  %3318 = vst [vmem:[%s5602_s14 + $0xd0] sm:$0xff] %v3286_v15  ;;  %v3287_v4 = vmul.f32 %v4674_v49, %v5759_v59 }
 0x31f   : > { %3316 = vst [vmem:[%s5602_s14 + $0xc0] sm:$0xff] %v3284_v61  ;;  %v3285_v13 = vmul.f32 %v4676_v41, %v5760_v50 }
 0x320   : > { %3319 = vst [vmem:[%s5602_s14 + $0xd8] sm:$0xff] %v3287_v4 }
 0x321   : > { %3317 = vst [vmem:[%s5602_s14 + $0xc8] sm:$0xff] %v3285_v13 }
 0x323   : > { %v4678_v7 = vpop.eup %4677 }
 0x324   : > { %v4680_v34 = vpop.eup %4679  ;;  %v3290_v39 = vmul.f32 %v4678_v7, %v5761_v44 }
 0x325   : > { %v4682_v42 = vpop.eup %4681  ;;  %v3288_v0 = vmul.f32 %v4680_v34, %v5762_v43 }
 0x326   : > { %v4684_v30 = vpop.eup %4683  ;;  %3322 = vst [vmem:[%s5602_s14 + $0xf0] sm:$0xff] %v3290_v39  ;;  %v3291_v29 = vmul.f32 %v4682_v42, %v5763_v40 }
 0x327   : > { %3320 = vst [vmem:[%s5602_s14 + $0xe0] sm:$0xff] %v3288_v0  ;;  %v3289_v45 = vmul.f32 %v4684_v30, %v5764_v8 }
 0x328   : > { %3323 = vst [vmem:[%s5602_s14 + $0xf8] sm:$0xff] %v3291_v29 }
 0x329   : > { %3321 = vst [vmem:[%s5602_s14 + $0xe8] sm:$0xff] %v3289_v45 }
 0x32a PF: > { %s14_s15 = sadd.s32 1, %s4691_s15  }
 0x32b   : > { %p11_p5 = scmp.ge.s32.totalorder %s14_s15, 4  }
 0x32d   :  { %13 = sbr.rel (!%p11_p5) target bundleno = 1 (0x1), region = 76 }

</bundles_post_ra>
